<compile_context>
chip_gen: v7x
topology: tpu7x:2x2x1
jax: 0.10.0
libtpu: 0.0.40
codegen_flags: <defaults>
</compile_context>

<pallas_src>
import jax
import jax.numpy as jnp
import numpy as np
from jax import lax
from jax.experimental import pallas as pl
from jax.experimental.pallas import tpu as pltpu

EPS = 1e-5


def _make_kernel(C, Cp, H, W, HsWs):
    HW = H * W
    inv_n_sp, inv_nm1_sp = 1.0 / float(HW), 1.0 / float(HW - 1)
    inv_n_st, inv_nm1_st = 1.0 / float(HsWs), 1.0 / float(HsWs - 1)

    def _stats(a, inv_n, inv_nm1):
        # Single-pass per-channel stats: sum and sum-of-squares in one traversal.
        # a: (Cp, n) -> mean, unbiased variance, each (Cp, 1), all f32.
        s = jnp.sum(a, axis=1, keepdims=True)
        sq = jnp.sum(a * a, axis=1, keepdims=True)
        mean = s * inv_n
        var = jnp.maximum(sq - s * mean, 0.0) * inv_nm1
        return mean, var

    def kernel(x_ref, style_ref, w1_ref, b1_ref, w2_ref, b2_ref, out_ref):
        x = x_ref[0]                       # (Cp, HW) f32
        style = style_ref[0]               # (Cp, HsWs) f32

        # ---- boundary masks from an in-kernel iota (no host index arrays) ----
        # Float mul/floor math (exact for HW << 2^23) avoids int vector division.
        flat = lax.broadcasted_iota(jnp.int32, (1, HW), 1).astype(jnp.float32)
        rowf = jnp.floor((flat + 0.5) * (1.0 / W))      # h index of each flat pos
        colf = flat - rowf * W                          # w index of each flat pos
        first_col = colf < 0.5
        last_col = colf > (W - 1.5)
        first_row = rowf < 0.5
        last_row = rowf > (H - 1.5)

        # ---- style statistics (shared by both adain applications) ----
        s_mean, s_var = _stats(style, inv_n_st, inv_nm1_st)
        s_std = jnp.sqrt(s_var + EPS)                   # (Cp, 1)

        def shifted_planes(a):
            # 9 reflect-shifted copies of `a` (Cp, HW), ordered by tap t = kh*3+kw;
            # planes[t][c, h*W + w] == reflect_pad(a)[c, h + kh, w + kw].  f32.
            right = pltpu.roll(a, HW - 1, axis=1)   # value from (h, w+1), flat wrap
            left = pltpu.roll(a, 1, axis=1)         # value from (h, w-1), flat wrap
            h_shift = [
                jnp.where(first_col, right, left),  # dw = -1 (reflect at w = 0)
                a,                                  # dw =  0
                jnp.where(last_col, left, right),   # dw = +1 (reflect at w = W-1)
            ]
            planes = [None] * 9
            for kw in range(3):
                av = h_shift[kw]
                down = pltpu.roll(av, HW - W, axis=1)   # value from row h+1
                up = pltpu.roll(av, W, axis=1)          # value from row h-1
                planes[0 * 3 + kw] = jnp.where(first_row, down, up)  # dh = -1
                planes[1 * 3 + kw] = av                              # dh =  0
                planes[2 * 3 + kw] = jnp.where(last_row, up, down)   # dh = +1
            return planes

        def conv3x3(a, w_ref, b_ref):
            # Single fused MXU matmul: (Cp, 9*Cp) bf16 @ (9*Cp, HW) bf16 -> f32.
            planes = shifted_planes(a)                          # 9 x (Cp, HW) f32
            big = jnp.concatenate(planes, axis=0)               # (9*Cp, HW) f32
            acc = jnp.dot(w_ref[...], big.astype(jnp.bfloat16),
                          preferred_element_type=jnp.float32)   # (Cp, HW) f32
            return acc + b_ref[...]                             # bias (Cp,1) bcast

        def adain(a):
            c_mean, c_var = _stats(a, inv_n_sp, inv_nm1_sp)
            inv_std = lax.rsqrt(c_var + EPS)        # EUP rsqrt instead of divide
            return (a - c_mean) * (inv_std * s_std) + s_mean

        out = jnp.maximum(conv3x3(x, w1_ref, b1_ref), 0.0)   # conv1 + ReLU
        out = adain(out)
        out = conv3x3(out, w2_ref, b2_ref)                   # conv2 (no act)
        out = adain(out)
        res = x + out                                        # residual add (Cp, HW)
        out_ref[0] = res[:C, :]                              # write only real channels

    return kernel


def residual_block_forward(x, content_features, style_features, params):
    """ResidualBlock.forward(x, content_features, style_features). NCHW layout."""
    del content_features                    # unused in the original torch forward too
    w1, b1, w2, b2 = params
    N, C, H, W = x.shape
    _, _, Hs, Ws = style_features.shape
    assert H >= 2 and W >= 2, "reflect padding needs H, W >= 2"
    HW, HsWs = H * W, Hs * Ws
    assert HW > 1 and HsWs > 1, "unbiased variance needs > 1 spatial element"

    # Pad channels up to a multiple of 8 (sublane alignment).  Padded channels
    # carry zero weights / zero data, so they are mathematically inert.
    Cp = max(8, ((C + 7) // 8) * 8)
    cpad = Cp - C

    x_flat = jnp.pad(x.reshape(N, C, HW).astype(jnp.float32),
                     ((0, 0), (0, cpad), (0, 0)))
    s_flat = jnp.pad(style_features.reshape(N, C, HsWs).astype(jnp.float32),
                     ((0, 0), (0, cpad), (0, 0)))

    def prep_w(w):
        # (Cout, Cin, 3, 3) -> fused (Cp, 9*Cp) bf16, column index = (kh*3+kw)*Cp + cin
        wp = jnp.pad(w.astype(jnp.float32),
                     ((0, cpad), (0, cpad), (0, 0), (0, 0)))
        wf = jnp.transpose(wp, (0, 2, 3, 1)).reshape(Cp, 9 * Cp)
        return wf.astype(jnp.bfloat16)

    def prep_b(b):
        return jnp.pad(b.astype(jnp.float32), ((0, cpad),)).reshape(Cp, 1)

    w1_t, w2_t = prep_w(w1), prep_w(w2)
    b1_c, b2_c = prep_b(b1), prep_b(b2)

    kernel = _make_kernel(C, Cp, H, W, HsWs)

    # ---- VMEM budget: tiles + fused weights + shifted planes (bf16) + work ----
    x_tile = Cp * HW * 4
    s_tile = Cp * HsWs * 4
    o_tile = C * HW * 4
    w_bytes = 2 * (Cp * 9 * Cp * 2 + Cp * 4)
    plane_bytes = 9 * Cp * HW * 4 + 9 * Cp * HW * 2
    work_bytes = 8 * Cp * HW * 4
    est = 2 * (x_tile + s_tile + o_tile) + 2 * w_bytes + plane_bytes + work_bytes
    vmem_limit = int(min(max(2 * est, 16 << 20), 56 << 20))   # <=56 MiB: valid on v7x too

    def _build(single_buffer):
        const_kw = dict(pipeline_mode=pl.Buffered(1)) if single_buffer else {}
        in_specs = [
            pl.BlockSpec((1, Cp, HW), lambda n: (n, 0, 0)),       # x (lane-dense)
            pl.BlockSpec((1, Cp, HsWs), lambda n: (n, 0, 0)),     # style
            pl.BlockSpec((Cp, 9 * Cp), lambda n: (0, 0), **const_kw),  # w1 fused
            pl.BlockSpec((Cp, 1), lambda n: (0, 0), **const_kw),       # b1
            pl.BlockSpec((Cp, 9 * Cp), lambda n: (0, 0), **const_kw),  # w2 fused
            pl.BlockSpec((Cp, 1), lambda n: (0, 0), **const_kw),       # b2
        ]
        return pl.pallas_call(
            kernel,
            grid=(N,),
            in_specs=in_specs,
            out_specs=pl.BlockSpec((1, C, HW), lambda n: (n, 0, 0)),
            out_shape=jax.ShapeDtypeStruct((N, C, HW), jnp.float32),
            compiler_params=pltpu.CompilerParams(
                dimension_semantics=("parallel",),   # batch shards across TCs on v7x
                vmem_limit_bytes=vmem_limit),
        )

    args = (x_flat, s_flat, w1_t, b1_c, w2_t, b2_c)
    try:
        out_flat = _build(True)(*args)      # single-buffered constant operands
    except Exception:
        out_flat = _build(False)(*args)     # fallback: default double buffering

    return out_flat.reshape(N, C, H, W)


# ---------------- pure-JAX reference (for correctness check) ----------------
def _adain_ref(content, style):
    c_mean = content.mean(axis=(2, 3), keepdims=True)
    c_std = jnp.sqrt(content.var(axis=(2, 3), keepdims=True, ddof=1) + EPS)
    s_mean = style.mean(axis=(2, 3), keepdims=True)
    s_std = jnp.sqrt(style.var(axis=(2, 3), keepdims=True, ddof=1) + EPS)
    return (content - c_mean) / c_std * s_std + s_mean


def ref_forward(x, style, w1, b1, w2, b2):
    def conv_reflect(inp, w, b):
        p = jnp.pad(inp, ((0, 0), (0, 0), (1, 1), (1, 1)), mode="reflect")
        out = lax.conv_general_dilated(
            p, w, (1, 1), "VALID",
            dimension_numbers=("NCHW", "OIHW", "NCHW"),
            precision=lax.Precision.HIGHEST)
        return out + b[None, :, None, None]

    out = jax.nn.relu(conv_reflect(x, w1, b1))
    out = _adain_ref(out, style)
    out = conv_reflect(out, w2, b2)
    out = _adain_ref(out, style)
    return x + out


if __name__ == "__main__":
    N, C, H, W = 2, 4, 16, 16

    key = jax.random.PRNGKey(0)
    k1, k2, k3, k4, k5, k6, k7 = jax.random.split(key, 7)
    x = jax.random.normal(k1, (N, C, H, W), jnp.float32)
    content_features = jax.random.normal(k2, (N, C, H, W), jnp.float32)  # unused
    style_features = jax.random.normal(k3, (N, C, H, W), jnp.float32)

    # Deterministic synthetic parameters (Conv2d(C, C, 3, 3) x 2, with biases).
    w1 = 0.1 * jax.random.normal(k4, (C, C, 3, 3), jnp.float32)
    b1 = 0.1 * jax.random.normal(k5, (C,), jnp.float32)
    w2 = 0.1 * jax.random.normal(k6, (C, C, 3, 3), jnp.float32)
    b2 = 0.1 * jax.random.normal(k7, (C,), jnp.float32)

    out = residual_block_forward(x, content_features, style_features,
                                 (w1, b1, w2, b2))
    out = jax.block_until_ready(out)

    ref = ref_forward(x, style_features, w1, b1, w2, b2)
    # Tolerance accounts for bf16 MXU operands (f32 accumulation) in the kernel
    # versus the full-f32 HIGHEST-precision reference.
    np.testing.assert_allclose(np.asarray(out), np.asarray(ref),
                               rtol=2e-2, atol=2e-2)
    assert out.shape == (N, C, H, W)
    print("KERNEL_OK")
</pallas_src>

<mosaic_0001>
module attributes {stable_mosaic.version = 11 : i64} {
  func.func @kernel(%arg0: i32, %arg1: memref<1x8x256xf32, #tpu.memory_space<vmem>>, %arg2: memref<1x8x256xf32, #tpu.memory_space<vmem>>, %arg3: memref<8x72xbf16, #tpu.memory_space<vmem>>, %arg4: memref<8x1xf32, #tpu.memory_space<vmem>>, %arg5: memref<8x72xbf16, #tpu.memory_space<vmem>>, %arg6: memref<8x1xf32, #tpu.memory_space<vmem>>, %arg7: memref<1x4x256xf32, #tpu.memory_space<vmem>>) attributes {dimension_semantics = [#tpu.dimension_semantics<parallel>], iteration_bounds = array<i64: 2>, scalar_prefetch = 0 : i64, scratch_operands = 0 : i64, tpu.core_type = #tpu.core_type<tc>, window_params = [{transform_indices = @transform_0, window_bounds = array<i64: 1, 8, 256>}, {transform_indices = @transform_1, window_bounds = array<i64: 1, 8, 256>}, {pipeline_mode = #tpu.pipeline_mode<synchronous>, transform_indices = @transform_2, window_bounds = array<i64: 8, 72>}, {pipeline_mode = #tpu.pipeline_mode<synchronous>, transform_indices = @transform_3, window_bounds = array<i64: 8, 1>}, {pipeline_mode = #tpu.pipeline_mode<synchronous>, transform_indices = @transform_4, window_bounds = array<i64: 8, 72>}, {pipeline_mode = #tpu.pipeline_mode<synchronous>, transform_indices = @transform_5, window_bounds = array<i64: 8, 1>}, {transform_indices = @transform_6, window_bounds = array<i64: 1, 4, 256>}]} {
    %c0 = arith.constant 0 : index
    %c0_0 = arith.constant 0 : index
    %c0_1 = arith.constant 0 : index
    %0 = vector.load %arg1[%c0, %c0_0, %c0_1] : memref<1x8x256xf32, #tpu.memory_space<vmem>>, vector<1x8x256xf32>
    %1 = vector.shape_cast %0 : vector<1x8x256xf32> to vector<8x256xf32>
    %c0_2 = arith.constant 0 : index
    %c0_3 = arith.constant 0 : index
    %c0_4 = arith.constant 0 : index
    %2 = vector.load %arg2[%c0_2, %c0_3, %c0_4] : memref<1x8x256xf32, #tpu.memory_space<vmem>>, vector<1x8x256xf32>
    %3 = vector.shape_cast %2 : vector<1x8x256xf32> to vector<8x256xf32>
    %4 = tpu.iota {dimensions = array<i32: 1>} : vector<1x256xi32>
    %5 = arith.sitofp %4 : vector<1x256xi32> to vector<1x256xf32>
    %cst = arith.constant 5.000000e-01 : f32
    %6 = vector.broadcast %cst : f32 to vector<1x256xf32>
    %7 = arith.addf %5, %6 : vector<1x256xf32>
    %cst_5 = arith.constant 6.250000e-02 : f32
    %8 = vector.broadcast %cst_5 : f32 to vector<1x256xf32>
    %9 = arith.mulf %7, %8 : vector<1x256xf32>
    %10 = math.floor %9 : vector<1x256xf32>
    %cst_6 = arith.constant 1.600000e+01 : f32
    %11 = vector.broadcast %cst_6 : f32 to vector<1x256xf32>
    %12 = arith.mulf %10, %11 : vector<1x256xf32>
    %13 = arith.subf %5, %12 : vector<1x256xf32>
    %cst_7 = arith.constant 5.000000e-01 : f32
    %14 = vector.broadcast %cst_7 : f32 to vector<1x256xf32>
    %15 = arith.cmpf olt, %13, %14 : vector<1x256xf32>
    %cst_8 = arith.constant 1.450000e+01 : f32
    %16 = vector.broadcast %cst_8 : f32 to vector<1x256xf32>
    %17 = arith.cmpf ogt, %13, %16 : vector<1x256xf32>
    %cst_9 = arith.constant 5.000000e-01 : f32
    %18 = vector.broadcast %cst_9 : f32 to vector<1x256xf32>
    %19 = arith.cmpf olt, %10, %18 : vector<1x256xf32>
    %cst_10 = arith.constant 1.450000e+01 : f32
    %20 = vector.broadcast %cst_10 : f32 to vector<1x256xf32>
    %21 = arith.cmpf ogt, %10, %20 : vector<1x256xf32>
    %cst_11 = arith.constant dense<0.000000e+00> : vector<8xf32>
    %22 = vector.multi_reduction <add>, %3, %cst_11 [1] : vector<8x256xf32> to vector<8xf32>
    %23 = vector.shape_cast %22 : vector<8xf32> to vector<8x1xf32>
    %24 = arith.mulf %3, %3 : vector<8x256xf32>
    %cst_12 = arith.constant dense<0.000000e+00> : vector<8xf32>
    %25 = vector.multi_reduction <add>, %24, %cst_12 [1] : vector<8x256xf32> to vector<8xf32>
    %26 = vector.shape_cast %25 : vector<8xf32> to vector<8x1xf32>
    %cst_13 = arith.constant 3.906250e-03 : f32
    %27 = vector.broadcast %cst_13 : f32 to vector<8x1xf32>
    %28 = arith.mulf %23, %27 : vector<8x1xf32>
    %29 = arith.mulf %23, %28 : vector<8x1xf32>
    %30 = arith.subf %26, %29 : vector<8x1xf32>
    %cst_14 = arith.constant 0.000000e+00 : f32
    %31 = vector.broadcast %cst_14 : f32 to vector<8x1xf32>
    %32 = arith.maximumf %30, %31 : vector<8x1xf32>
    %cst_15 = arith.constant 0.00392156886 : f32
    %33 = vector.broadcast %cst_15 : f32 to vector<8x1xf32>
    %34 = arith.mulf %32, %33 : vector<8x1xf32>
    %cst_16 = arith.constant 9.99999974E-6 : f32
    %35 = vector.broadcast %cst_16 : f32 to vector<8x1xf32>
    %36 = arith.addf %34, %35 : vector<8x1xf32>
    %37 = math.sqrt %36 : vector<8x1xf32>
    %c255_i32 = arith.constant 255 : i32
    %38 = tpu.dynamic_rotate %1 by %c255_i32 dim 1 : vector<8x256xf32>, i32 -> vector<8x256xf32>
    %c1_i32 = arith.constant 1 : i32
    %39 = tpu.dynamic_rotate %1 by %c1_i32 dim 1 : vector<8x256xf32>, i32 -> vector<8x256xf32>
    %40 = vector.shape_cast %15 : vector<1x256xi1> to vector<1x256xi1>
    %41 = vector.broadcast %40 : vector<1x256xi1> to vector<8x256xi1>
    %42 = arith.select %41, %38, %39 : vector<8x256xi1>, vector<8x256xf32>
    %43 = vector.shape_cast %17 : vector<1x256xi1> to vector<1x256xi1>
    %44 = vector.broadcast %43 : vector<1x256xi1> to vector<8x256xi1>
    %45 = arith.select %44, %39, %38 : vector<8x256xi1>, vector<8x256xf32>
    %c240_i32 = arith.constant 240 : i32
    %46 = tpu.dynamic_rotate %42 by %c240_i32 dim 1 : vector<8x256xf32>, i32 -> vector<8x256xf32>
    %c16_i32 = arith.constant 16 : i32
    %47 = tpu.dynamic_rotate %42 by %c16_i32 dim 1 : vector<8x256xf32>, i32 -> vector<8x256xf32>
    %48 = vector.shape_cast %19 : vector<1x256xi1> to vector<1x256xi1>
    %49 = vector.broadcast %48 : vector<1x256xi1> to vector<8x256xi1>
    %50 = arith.select %49, %46, %47 : vector<8x256xi1>, vector<8x256xf32>
    %51 = vector.shape_cast %21 : vector<1x256xi1> to vector<1x256xi1>
    %52 = vector.broadcast %51 : vector<1x256xi1> to vector<8x256xi1>
    %53 = arith.select %52, %47, %46 : vector<8x256xi1>, vector<8x256xf32>
    %c240_i32_17 = arith.constant 240 : i32
    %54 = tpu.dynamic_rotate %1 by %c240_i32_17 dim 1 : vector<8x256xf32>, i32 -> vector<8x256xf32>
    %c16_i32_18 = arith.constant 16 : i32
    %55 = tpu.dynamic_rotate %1 by %c16_i32_18 dim 1 : vector<8x256xf32>, i32 -> vector<8x256xf32>
    %56 = vector.shape_cast %19 : vector<1x256xi1> to vector<1x256xi1>
    %57 = vector.broadcast %56 : vector<1x256xi1> to vector<8x256xi1>
    %58 = arith.select %57, %54, %55 : vector<8x256xi1>, vector<8x256xf32>
    %59 = vector.shape_cast %21 : vector<1x256xi1> to vector<1x256xi1>
    %60 = vector.broadcast %59 : vector<1x256xi1> to vector<8x256xi1>
    %61 = arith.select %60, %55, %54 : vector<8x256xi1>, vector<8x256xf32>
    %c240_i32_19 = arith.constant 240 : i32
    %62 = tpu.dynamic_rotate %45 by %c240_i32_19 dim 1 : vector<8x256xf32>, i32 -> vector<8x256xf32>
    %c16_i32_20 = arith.constant 16 : i32
    %63 = tpu.dynamic_rotate %45 by %c16_i32_20 dim 1 : vector<8x256xf32>, i32 -> vector<8x256xf32>
    %64 = vector.shape_cast %19 : vector<1x256xi1> to vector<1x256xi1>
    %65 = vector.broadcast %64 : vector<1x256xi1> to vector<8x256xi1>
    %66 = arith.select %65, %62, %63 : vector<8x256xi1>, vector<8x256xf32>
    %67 = vector.shape_cast %21 : vector<1x256xi1> to vector<1x256xi1>
    %68 = vector.broadcast %67 : vector<1x256xi1> to vector<8x256xi1>
    %69 = arith.select %68, %63, %62 : vector<8x256xi1>, vector<8x256xf32>
    %70 = tpu.concatenate %50, %58, %66, %42, %1, %45, %53, %61, %69 in 0 : vector<8x256xf32>, vector<8x256xf32>, vector<8x256xf32>, vector<8x256xf32>, vector<8x256xf32>, vector<8x256xf32>, vector<8x256xf32>, vector<8x256xf32>, vector<8x256xf32> -> vector<72x256xf32>
    %c0_21 = arith.constant 0 : index
    %c0_22 = arith.constant 0 : index
    %71 = vector.load %arg3[%c0_21, %c0_22] : memref<8x72xbf16, #tpu.memory_space<vmem>>, vector<8x72xbf16>
    %72 = arith.truncf %70 : vector<72x256xf32> to vector<72x256xbf16>
    %cst_23 = arith.constant dense<0.000000e+00> : vector<8x256xf32>
    %73 = tpu.matmul %71, %72, %cst_23 {dimension_numbers = #tpu.dot_dimension_numbers<[1], [0], [0], [1], [0, 0, 1, 1], [], []>} : vector<8x72xbf16>, vector<72x256xbf16>, vector<8x256xf32> -> vector<8x256xf32>
    %c0_24 = arith.constant 0 : index
    %c0_25 = arith.constant 0 : index
    %74 = vector.load %arg4[%c0_24, %c0_25] : memref<8x1xf32, #tpu.memory_space<vmem>>, vector<8x1xf32>
    %75 = vector.broadcast %74 : vector<8x1xf32> to vector<8x256xf32>
    %76 = arith.addf %73, %75 : vector<8x256xf32>
    %cst_26 = arith.constant 0.000000e+00 : f32
    %77 = vector.broadcast %cst_26 : f32 to vector<8x256xf32>
    %78 = arith.maximumf %76, %77 : vector<8x256xf32>
    %cst_27 = arith.constant dense<0.000000e+00> : vector<8xf32>
    %79 = vector.multi_reduction <add>, %78, %cst_27 [1] : vector<8x256xf32> to vector<8xf32>
    %80 = vector.shape_cast %79 : vector<8xf32> to vector<8x1xf32>
    %81 = arith.mulf %78, %78 : vector<8x256xf32>
    %cst_28 = arith.constant dense<0.000000e+00> : vector<8xf32>
    %82 = vector.multi_reduction <add>, %81, %cst_28 [1] : vector<8x256xf32> to vector<8xf32>
    %83 = vector.shape_cast %82 : vector<8xf32> to vector<8x1xf32>
    %cst_29 = arith.constant 3.906250e-03 : f32
    %84 = vector.broadcast %cst_29 : f32 to vector<8x1xf32>
    %85 = arith.mulf %80, %84 : vector<8x1xf32>
    %86 = arith.mulf %80, %85 : vector<8x1xf32>
    %87 = arith.subf %83, %86 : vector<8x1xf32>
    %cst_30 = arith.constant 0.000000e+00 : f32
    %88 = vector.broadcast %cst_30 : f32 to vector<8x1xf32>
    %89 = arith.maximumf %87, %88 : vector<8x1xf32>
    %cst_31 = arith.constant 0.00392156886 : f32
    %90 = vector.broadcast %cst_31 : f32 to vector<8x1xf32>
    %91 = arith.mulf %89, %90 : vector<8x1xf32>
    %cst_32 = arith.constant 9.99999974E-6 : f32
    %92 = vector.broadcast %cst_32 : f32 to vector<8x1xf32>
    %93 = arith.addf %91, %92 : vector<8x1xf32>
    %94 = math.rsqrt %93 : vector<8x1xf32>
    %95 = vector.broadcast %85 : vector<8x1xf32> to vector<8x256xf32>
    %96 = arith.subf %78, %95 : vector<8x256xf32>
    %97 = arith.mulf %94, %37 : vector<8x1xf32>
    %98 = vector.broadcast %97 : vector<8x1xf32> to vector<8x256xf32>
    %99 = arith.mulf %96, %98 : vector<8x256xf32>
    %100 = vector.broadcast %28 : vector<8x1xf32> to vector<8x256xf32>
    %101 = arith.addf %99, %100 : vector<8x256xf32>
    %c255_i32_33 = arith.constant 255 : i32
    %102 = tpu.dynamic_rotate %101 by %c255_i32_33 dim 1 : vector<8x256xf32>, i32 -> vector<8x256xf32>
    %c1_i32_34 = arith.constant 1 : i32
    %103 = tpu.dynamic_rotate %101 by %c1_i32_34 dim 1 : vector<8x256xf32>, i32 -> vector<8x256xf32>
    %104 = vector.shape_cast %15 : vector<1x256xi1> to vector<1x256xi1>
    %105 = vector.broadcast %104 : vector<1x256xi1> to vector<8x256xi1>
    %106 = arith.select %105, %102, %103 : vector<8x256xi1>, vector<8x256xf32>
    %107 = vector.shape_cast %17 : vector<1x256xi1> to vector<1x256xi1>
    %108 = vector.broadcast %107 : vector<1x256xi1> to vector<8x256xi1>
    %109 = arith.select %108, %103, %102 : vector<8x256xi1>, vector<8x256xf32>
    %c240_i32_35 = arith.constant 240 : i32
    %110 = tpu.dynamic_rotate %106 by %c240_i32_35 dim 1 : vector<8x256xf32>, i32 -> vector<8x256xf32>
    %c16_i32_36 = arith.constant 16 : i32
    %111 = tpu.dynamic_rotate %106 by %c16_i32_36 dim 1 : vector<8x256xf32>, i32 -> vector<8x256xf32>
    %112 = vector.shape_cast %19 : vector<1x256xi1> to vector<1x256xi1>
    %113 = vector.broadcast %112 : vector<1x256xi1> to vector<8x256xi1>
    %114 = arith.select %113, %110, %111 : vector<8x256xi1>, vector<8x256xf32>
    %115 = vector.shape_cast %21 : vector<1x256xi1> to vector<1x256xi1>
    %116 = vector.broadcast %115 : vector<1x256xi1> to vector<8x256xi1>
    %117 = arith.select %116, %111, %110 : vector<8x256xi1>, vector<8x256xf32>
    %c240_i32_37 = arith.constant 240 : i32
    %118 = tpu.dynamic_rotate %101 by %c240_i32_37 dim 1 : vector<8x256xf32>, i32 -> vector<8x256xf32>
    %c16_i32_38 = arith.constant 16 : i32
    %119 = tpu.dynamic_rotate %101 by %c16_i32_38 dim 1 : vector<8x256xf32>, i32 -> vector<8x256xf32>
    %120 = vector.shape_cast %19 : vector<1x256xi1> to vector<1x256xi1>
    %121 = vector.broadcast %120 : vector<1x256xi1> to vector<8x256xi1>
    %122 = arith.select %121, %118, %119 : vector<8x256xi1>, vector<8x256xf32>
    %123 = vector.shape_cast %21 : vector<1x256xi1> to vector<1x256xi1>
    %124 = vector.broadcast %123 : vector<1x256xi1> to vector<8x256xi1>
    %125 = arith.select %124, %119, %118 : vector<8x256xi1>, vector<8x256xf32>
    %c240_i32_39 = arith.constant 240 : i32
    %126 = tpu.dynamic_rotate %109 by %c240_i32_39 dim 1 : vector<8x256xf32>, i32 -> vector<8x256xf32>
    %c16_i32_40 = arith.constant 16 : i32
    %127 = tpu.dynamic_rotate %109 by %c16_i32_40 dim 1 : vector<8x256xf32>, i32 -> vector<8x256xf32>
    %128 = vector.shape_cast %19 : vector<1x256xi1> to vector<1x256xi1>
    %129 = vector.broadcast %128 : vector<1x256xi1> to vector<8x256xi1>
    %130 = arith.select %129, %126, %127 : vector<8x256xi1>, vector<8x256xf32>
    %131 = vector.shape_cast %21 : vector<1x256xi1> to vector<1x256xi1>
    %132 = vector.broadcast %131 : vector<1x256xi1> to vector<8x256xi1>
    %133 = arith.select %132, %127, %126 : vector<8x256xi1>, vector<8x256xf32>
    %134 = tpu.concatenate %114, %122, %130, %106, %101, %109, %117, %125, %133 in 0 : vector<8x256xf32>, vector<8x256xf32>, vector<8x256xf32>, vector<8x256xf32>, vector<8x256xf32>, vector<8x256xf32>, vector<8x256xf32>, vector<8x256xf32>, vector<8x256xf32> -> vector<72x256xf32>
    %c0_41 = arith.constant 0 : index
    %c0_42 = arith.constant 0 : index
    %135 = vector.load %arg5[%c0_41, %c0_42] : memref<8x72xbf16, #tpu.memory_space<vmem>>, vector<8x72xbf16>
    %136 = arith.truncf %134 : vector<72x256xf32> to vector<72x256xbf16>
    %cst_43 = arith.constant dense<0.000000e+00> : vector<8x256xf32>
    %137 = tpu.matmul %135, %136, %cst_43 {dimension_numbers = #tpu.dot_dimension_numbers<[1], [0], [0], [1], [0, 0, 1, 1], [], []>} : vector<8x72xbf16>, vector<72x256xbf16>, vector<8x256xf32> -> vector<8x256xf32>
    %c0_44 = arith.constant 0 : index
    %c0_45 = arith.constant 0 : index
    %138 = vector.load %arg6[%c0_44, %c0_45] : memref<8x1xf32, #tpu.memory_space<vmem>>, vector<8x1xf32>
    %139 = vector.broadcast %138 : vector<8x1xf32> to vector<8x256xf32>
    %140 = arith.addf %137, %139 : vector<8x256xf32>
    %cst_46 = arith.constant dense<0.000000e+00> : vector<8xf32>
    %141 = vector.multi_reduction <add>, %140, %cst_46 [1] : vector<8x256xf32> to vector<8xf32>
    %142 = vector.shape_cast %141 : vector<8xf32> to vector<8x1xf32>
    %143 = arith.mulf %140, %140 : vector<8x256xf32>
    %cst_47 = arith.constant dense<0.000000e+00> : vector<8xf32>
    %144 = vector.multi_reduction <add>, %143, %cst_47 [1] : vector<8x256xf32> to vector<8xf32>
    %145 = vector.shape_cast %144 : vector<8xf32> to vector<8x1xf32>
    %cst_48 = arith.constant 3.906250e-03 : f32
    %146 = vector.broadcast %cst_48 : f32 to vector<8x1xf32>
    %147 = arith.mulf %142, %146 : vector<8x1xf32>
    %148 = arith.mulf %142, %147 : vector<8x1xf32>
    %149 = arith.subf %145, %148 : vector<8x1xf32>
    %cst_49 = arith.constant 0.000000e+00 : f32
    %150 = vector.broadcast %cst_49 : f32 to vector<8x1xf32>
    %151 = arith.maximumf %149, %150 : vector<8x1xf32>
    %cst_50 = arith.constant 0.00392156886 : f32
    %152 = vector.broadcast %cst_50 : f32 to vector<8x1xf32>
    %153 = arith.mulf %151, %152 : vector<8x1xf32>
    %cst_51 = arith.constant 9.99999974E-6 : f32
    %154 = vector.broadcast %cst_51 : f32 to vector<8x1xf32>
    %155 = arith.addf %153, %154 : vector<8x1xf32>
    %156 = math.rsqrt %155 : vector<8x1xf32>
    %157 = vector.broadcast %147 : vector<8x1xf32> to vector<8x256xf32>
    %158 = arith.subf %140, %157 : vector<8x256xf32>
    %159 = arith.mulf %156, %37 : vector<8x1xf32>
    %160 = vector.broadcast %159 : vector<8x1xf32> to vector<8x256xf32>
    %161 = arith.mulf %158, %160 : vector<8x256xf32>
    %162 = vector.broadcast %28 : vector<8x1xf32> to vector<8x256xf32>
    %163 = arith.addf %161, %162 : vector<8x256xf32>
    %164 = arith.addf %1, %163 : vector<8x256xf32>
    %165 = vector.extract_strided_slice %164 {offsets = [0, 0], sizes = [4, 256], strides = [1, 1]} : vector<8x256xf32> to vector<4x256xf32>
    %c0_52 = arith.constant 0 : index
    %c0_53 = arith.constant 0 : index
    %c0_54 = arith.constant 0 : index
    %166 = vector.load %arg7[%c0_52, %c0_53, %c0_54] : memref<1x4x256xf32, #tpu.memory_space<vmem>>, vector<1x4x256xf32>
    %167 = vector.shape_cast %166 : vector<1x4x256xf32> to vector<4x256xf32>
    %168 = vector.shape_cast %165 : vector<4x256xf32> to vector<1x4x256xf32>
    tpu.vector_store %arg7[%c0_52, %c0_53, %c0_54], %168 {strides = array<i32>} : memref<1x4x256xf32, #tpu.memory_space<vmem>>, vector<1x4x256xf32>,
    return
  }
  func.func @transform_0(%arg0: i32) -> (i32, i32, i32) {
    %c0_i32 = arith.constant 0 : i32
    %c0_i32_0 = arith.constant 0 : i32
    %c0_i32_1 = arith.constant 0 : i32
    return %arg0, %c0_i32, %c0_i32_0 : i32, i32, i32
  }
  func.func @transform_1(%arg0: i32) -> (i32, i32, i32) {
    %c0_i32 = arith.constant 0 : i32
    %c0_i32_0 = arith.constant 0 : i32
    %c0_i32_1 = arith.constant 0 : i32
    return %arg0, %c0_i32, %c0_i32_0 : i32, i32, i32
  }
  func.func @transform_2(%arg0: i32) -> (i32, i32) {
    %c0_i32 = arith.constant 0 : i32
    %c0_i32_0 = arith.constant 0 : i32
    %c0_i32_1 = arith.constant 0 : i32
    return %c0_i32, %c0_i32_0 : i32, i32
  }
  func.func @transform_3(%arg0: i32) -> (i32, i32) {
    %c0_i32 = arith.constant 0 : i32
    %c0_i32_0 = arith.constant 0 : i32
    %c0_i32_1 = arith.constant 0 : i32
    return %c0_i32, %c0_i32_0 : i32, i32
  }
  func.func @transform_4(%arg0: i32) -> (i32, i32) {
    %c0_i32 = arith.constant 0 : i32
    %c0_i32_0 = arith.constant 0 : i32
    %c0_i32_1 = arith.constant 0 : i32
    return %c0_i32, %c0_i32_0 : i32, i32
  }
  func.func @transform_5(%arg0: i32) -> (i32, i32) {
    %c0_i32 = arith.constant 0 : i32
    %c0_i32_0 = arith.constant 0 : i32
    %c0_i32_1 = arith.constant 0 : i32
    return %c0_i32, %c0_i32_0 : i32, i32
  }
  func.func @transform_6(%arg0: i32) -> (i32, i32, i32) {
    %c0_i32 = arith.constant 0 : i32
    %c0_i32_0 = arith.constant 0 : i32
    %c0_i32_1 = arith.constant 0 : i32
    return %arg0, %c0_i32, %c0_i32_0 : i32, i32, i32
  }
}

module attributes {stable_mosaic.version = 11 : i64} {
  func.func @kernel(%arg0: i32, %arg1: memref<1x8x256xf32, #tpu.memory_space<vmem>>, %arg2: memref<1x8x256xf32, #tpu.memory_space<vmem>>, %arg3: memref<8x72xbf16, #tpu.memory_space<vmem>>, %arg4: memref<8x1xf32, #tpu.memory_space<vmem>>, %arg5: memref<8x72xbf16, #tpu.memory_space<vmem>>, %arg6: memref<8x1xf32, #tpu.memory_space<vmem>>, %arg7: memref<1x4x256xf32, #tpu.memory_space<vmem>>) attributes {dimension_semantics = [#tpu.dimension_semantics<parallel>], iteration_bounds = array<i64: 2>, scalar_prefetch = 0 : i64, scratch_operands = 0 : i64, tpu.core_type = #tpu.core_type<tc>, window_params = [{transform_indices = @transform_0, window_bounds = array<i64: 1, 8, 256>}, {transform_indices = @transform_1, window_bounds = array<i64: 1, 8, 256>}, {pipeline_mode = #tpu.pipeline_mode<synchronous>, transform_indices = @transform_2, window_bounds = array<i64: 8, 72>}, {pipeline_mode = #tpu.pipeline_mode<synchronous>, transform_indices = @transform_3, window_bounds = array<i64: 8, 1>}, {pipeline_mode = #tpu.pipeline_mode<synchronous>, transform_indices = @transform_4, window_bounds = array<i64: 8, 72>}, {pipeline_mode = #tpu.pipeline_mode<synchronous>, transform_indices = @transform_5, window_bounds = array<i64: 8, 1>}, {transform_indices = @transform_6, window_bounds = array<i64: 1, 4, 256>}]} {
    %c0 = arith.constant 0 : index
    %c0_0 = arith.constant 0 : index
    %c0_1 = arith.constant 0 : index
    %0 = vector.load %arg1[%c0, %c0_0, %c0_1] : memref<1x8x256xf32, #tpu.memory_space<vmem>>, vector<1x8x256xf32>
    %1 = vector.shape_cast %0 : vector<1x8x256xf32> to vector<8x256xf32>
    %c0_2 = arith.constant 0 : index
    %c0_3 = arith.constant 0 : index
    %c0_4 = arith.constant 0 : index
    %2 = vector.load %arg2[%c0_2, %c0_3, %c0_4] : memref<1x8x256xf32, #tpu.memory_space<vmem>>, vector<1x8x256xf32>
    %3 = vector.shape_cast %2 : vector<1x8x256xf32> to vector<8x256xf32>
    %4 = tpu.iota {dimensions = array<i32: 1>} : vector<1x256xi32>
    %5 = arith.sitofp %4 : vector<1x256xi32> to vector<1x256xf32>
    %cst = arith.constant 5.000000e-01 : f32
    %6 = vector.broadcast %cst : f32 to vector<1x256xf32>
    %7 = arith.addf %5, %6 : vector<1x256xf32>
    %cst_5 = arith.constant 6.250000e-02 : f32
    %8 = vector.broadcast %cst_5 : f32 to vector<1x256xf32>
    %9 = arith.mulf %7, %8 : vector<1x256xf32>
    %10 = math.floor %9 : vector<1x256xf32>
    %cst_6 = arith.constant 1.600000e+01 : f32
    %11 = vector.broadcast %cst_6 : f32 to vector<1x256xf32>
    %12 = arith.mulf %10, %11 : vector<1x256xf32>
    %13 = arith.subf %5, %12 : vector<1x256xf32>
    %cst_7 = arith.constant 5.000000e-01 : f32
    %14 = vector.broadcast %cst_7 : f32 to vector<1x256xf32>
    %15 = arith.cmpf olt, %13, %14 : vector<1x256xf32>
    %cst_8 = arith.constant 1.450000e+01 : f32
    %16 = vector.broadcast %cst_8 : f32 to vector<1x256xf32>
    %17 = arith.cmpf ogt, %13, %16 : vector<1x256xf32>
    %cst_9 = arith.constant 5.000000e-01 : f32
    %18 = vector.broadcast %cst_9 : f32 to vector<1x256xf32>
    %19 = arith.cmpf olt, %10, %18 : vector<1x256xf32>
    %cst_10 = arith.constant 1.450000e+01 : f32
    %20 = vector.broadcast %cst_10 : f32 to vector<1x256xf32>
    %21 = arith.cmpf ogt, %10, %20 : vector<1x256xf32>
    %cst_11 = arith.constant dense<0.000000e+00> : vector<8xf32>
    %22 = vector.multi_reduction <add>, %3, %cst_11 [1] : vector<8x256xf32> to vector<8xf32>
    %23 = vector.shape_cast %22 : vector<8xf32> to vector<8x1xf32>
    %24 = arith.mulf %3, %3 : vector<8x256xf32>
    %cst_12 = arith.constant dense<0.000000e+00> : vector<8xf32>
    %25 = vector.multi_reduction <add>, %24, %cst_12 [1] : vector<8x256xf32> to vector<8xf32>
    %26 = vector.shape_cast %25 : vector<8xf32> to vector<8x1xf32>
    %cst_13 = arith.constant 3.906250e-03 : f32
    %27 = vector.broadcast %cst_13 : f32 to vector<8x1xf32>
    %28 = arith.mulf %23, %27 : vector<8x1xf32>
    %29 = arith.mulf %23, %28 : vector<8x1xf32>
    %30 = arith.subf %26, %29 : vector<8x1xf32>
    %cst_14 = arith.constant 0.000000e+00 : f32
    %31 = vector.broadcast %cst_14 : f32 to vector<8x1xf32>
    %32 = arith.maximumf %30, %31 : vector<8x1xf32>
    %cst_15 = arith.constant 0.00392156886 : f32
    %33 = vector.broadcast %cst_15 : f32 to vector<8x1xf32>
    %34 = arith.mulf %32, %33 : vector<8x1xf32>
    %cst_16 = arith.constant 9.99999974E-6 : f32
    %35 = vector.broadcast %cst_16 : f32 to vector<8x1xf32>
    %36 = arith.addf %34, %35 : vector<8x1xf32>
    %37 = math.sqrt %36 : vector<8x1xf32>
    %c255_i32 = arith.constant 255 : i32
    %38 = tpu.dynamic_rotate %1 by %c255_i32 dim 1 : vector<8x256xf32>, i32 -> vector<8x256xf32>
    %c1_i32 = arith.constant 1 : i32
    %39 = tpu.dynamic_rotate %1 by %c1_i32 dim 1 : vector<8x256xf32>, i32 -> vector<8x256xf32>
    %40 = vector.shape_cast %15 : vector<1x256xi1> to vector<1x256xi1>
    %41 = vector.broadcast %40 : vector<1x256xi1> to vector<8x256xi1>
    %42 = arith.select %41, %38, %39 : vector<8x256xi1>, vector<8x256xf32>
    %43 = vector.shape_cast %17 : vector<1x256xi1> to vector<1x256xi1>
    %44 = vector.broadcast %43 : vector<1x256xi1> to vector<8x256xi1>
    %45 = arith.select %44, %39, %38 : vector<8x256xi1>, vector<8x256xf32>
    %c240_i32 = arith.constant 240 : i32
    %46 = tpu.dynamic_rotate %42 by %c240_i32 dim 1 : vector<8x256xf32>, i32 -> vector<8x256xf32>
    %c16_i32 = arith.constant 16 : i32
    %47 = tpu.dynamic_rotate %42 by %c16_i32 dim 1 : vector<8x256xf32>, i32 -> vector<8x256xf32>
    %48 = vector.shape_cast %19 : vector<1x256xi1> to vector<1x256xi1>
    %49 = vector.broadcast %48 : vector<1x256xi1> to vector<8x256xi1>
    %50 = arith.select %49, %46, %47 : vector<8x256xi1>, vector<8x256xf32>
    %51 = vector.shape_cast %21 : vector<1x256xi1> to vector<1x256xi1>
    %52 = vector.broadcast %51 : vector<1x256xi1> to vector<8x256xi1>
    %53 = arith.select %52, %47, %46 : vector<8x256xi1>, vector<8x256xf32>
    %c240_i32_17 = arith.constant 240 : i32
    %54 = tpu.dynamic_rotate %1 by %c240_i32_17 dim 1 : vector<8x256xf32>, i32 -> vector<8x256xf32>
    %c16_i32_18 = arith.constant 16 : i32
    %55 = tpu.dynamic_rotate %1 by %c16_i32_18 dim 1 : vector<8x256xf32>, i32 -> vector<8x256xf32>
    %56 = vector.shape_cast %19 : vector<1x256xi1> to vector<1x256xi1>
    %57 = vector.broadcast %56 : vector<1x256xi1> to vector<8x256xi1>
    %58 = arith.select %57, %54, %55 : vector<8x256xi1>, vector<8x256xf32>
    %59 = vector.shape_cast %21 : vector<1x256xi1> to vector<1x256xi1>
    %60 = vector.broadcast %59 : vector<1x256xi1> to vector<8x256xi1>
    %61 = arith.select %60, %55, %54 : vector<8x256xi1>, vector<8x256xf32>
    %c240_i32_19 = arith.constant 240 : i32
    %62 = tpu.dynamic_rotate %45 by %c240_i32_19 dim 1 : vector<8x256xf32>, i32 -> vector<8x256xf32>
    %c16_i32_20 = arith.constant 16 : i32
    %63 = tpu.dynamic_rotate %45 by %c16_i32_20 dim 1 : vector<8x256xf32>, i32 -> vector<8x256xf32>
    %64 = vector.shape_cast %19 : vector<1x256xi1> to vector<1x256xi1>
    %65 = vector.broadcast %64 : vector<1x256xi1> to vector<8x256xi1>
    %66 = arith.select %65, %62, %63 : vector<8x256xi1>, vector<8x256xf32>
    %67 = vector.shape_cast %21 : vector<1x256xi1> to vector<1x256xi1>
    %68 = vector.broadcast %67 : vector<1x256xi1> to vector<8x256xi1>
    %69 = arith.select %68, %63, %62 : vector<8x256xi1>, vector<8x256xf32>
    %70 = tpu.concatenate %50, %58, %66, %42, %1, %45, %53, %61, %69 in 0 : vector<8x256xf32>, vector<8x256xf32>, vector<8x256xf32>, vector<8x256xf32>, vector<8x256xf32>, vector<8x256xf32>, vector<8x256xf32>, vector<8x256xf32>, vector<8x256xf32> -> vector<72x256xf32>
    %c0_21 = arith.constant 0 : index
    %c0_22 = arith.constant 0 : index
    %71 = vector.load %arg3[%c0_21, %c0_22] : memref<8x72xbf16, #tpu.memory_space<vmem>>, vector<8x72xbf16>
    %72 = arith.truncf %70 : vector<72x256xf32> to vector<72x256xbf16>
    %cst_23 = arith.constant dense<0.000000e+00> : vector<8x256xf32>
    %73 = tpu.matmul %71, %72, %cst_23 {dimension_numbers = #tpu.dot_dimension_numbers<[1], [0], [0], [1], [0, 0, 1, 1], [], []>} : vector<8x72xbf16>, vector<72x256xbf16>, vector<8x256xf32> -> vector<8x256xf32>
    %c0_24 = arith.constant 0 : index
    %c0_25 = arith.constant 0 : index
    %74 = vector.load %arg4[%c0_24, %c0_25] : memref<8x1xf32, #tpu.memory_space<vmem>>, vector<8x1xf32>
    %75 = vector.broadcast %74 : vector<8x1xf32> to vector<8x256xf32>
    %76 = arith.addf %73, %75 : vector<8x256xf32>
    %cst_26 = arith.constant 0.000000e+00 : f32
    %77 = vector.broadcast %cst_26 : f32 to vector<8x256xf32>
    %78 = arith.maximumf %76, %77 : vector<8x256xf32>
    %cst_27 = arith.constant dense<0.000000e+00> : vector<8xf32>
    %79 = vector.multi_reduction <add>, %78, %cst_27 [1] : vector<8x256xf32> to vector<8xf32>
    %80 = vector.shape_cast %79 : vector<8xf32> to vector<8x1xf32>
    %81 = arith.mulf %78, %78 : vector<8x256xf32>
    %cst_28 = arith.constant dense<0.000000e+00> : vector<8xf32>
    %82 = vector.multi_reduction <add>, %81, %cst_28 [1] : vector<8x256xf32> to vector<8xf32>
    %83 = vector.shape_cast %82 : vector<8xf32> to vector<8x1xf32>
    %cst_29 = arith.constant 3.906250e-03 : f32
    %84 = vector.broadcast %cst_29 : f32 to vector<8x1xf32>
    %85 = arith.mulf %80, %84 : vector<8x1xf32>
    %86 = arith.mulf %80, %85 : vector<8x1xf32>
    %87 = arith.subf %83, %86 : vector<8x1xf32>
    %cst_30 = arith.constant 0.000000e+00 : f32
    %88 = vector.broadcast %cst_30 : f32 to vector<8x1xf32>
    %89 = arith.maximumf %87, %88 : vector<8x1xf32>
    %cst_31 = arith.constant 0.00392156886 : f32
    %90 = vector.broadcast %cst_31 : f32 to vector<8x1xf32>
    %91 = arith.mulf %89, %90 : vector<8x1xf32>
    %cst_32 = arith.constant 9.99999974E-6 : f32
    %92 = vector.broadcast %cst_32 : f32 to vector<8x1xf32>
    %93 = arith.addf %91, %92 : vector<8x1xf32>
    %94 = math.rsqrt %93 : vector<8x1xf32>
    %95 = vector.broadcast %85 : vector<8x1xf32> to vector<8x256xf32>
    %96 = arith.subf %78, %95 : vector<8x256xf32>
    %97 = arith.mulf %94, %37 : vector<8x1xf32>
    %98 = vector.broadcast %97 : vector<8x1xf32> to vector<8x256xf32>
    %99 = arith.mulf %96, %98 : vector<8x256xf32>
    %100 = vector.broadcast %28 : vector<8x1xf32> to vector<8x256xf32>
    %101 = arith.addf %99, %100 : vector<8x256xf32>
    %c255_i32_33 = arith.constant 255 : i32
    %102 = tpu.dynamic_rotate %101 by %c255_i32_33 dim 1 : vector<8x256xf32>, i32 -> vector<8x256xf32>
    %c1_i32_34 = arith.constant 1 : i32
    %103 = tpu.dynamic_rotate %101 by %c1_i32_34 dim 1 : vector<8x256xf32>, i32 -> vector<8x256xf32>
    %104 = vector.shape_cast %15 : vector<1x256xi1> to vector<1x256xi1>
    %105 = vector.broadcast %104 : vector<1x256xi1> to vector<8x256xi1>
    %106 = arith.select %105, %102, %103 : vector<8x256xi1>, vector<8x256xf32>
    %107 = vector.shape_cast %17 : vector<1x256xi1> to vector<1x256xi1>
    %108 = vector.broadcast %107 : vector<1x256xi1> to vector<8x256xi1>
    %109 = arith.select %108, %103, %102 : vector<8x256xi1>, vector<8x256xf32>
    %c240_i32_35 = arith.constant 240 : i32
    %110 = tpu.dynamic_rotate %106 by %c240_i32_35 dim 1 : vector<8x256xf32>, i32 -> vector<8x256xf32>
    %c16_i32_36 = arith.constant 16 : i32
    %111 = tpu.dynamic_rotate %106 by %c16_i32_36 dim 1 : vector<8x256xf32>, i32 -> vector<8x256xf32>
    %112 = vector.shape_cast %19 : vector<1x256xi1> to vector<1x256xi1>
    %113 = vector.broadcast %112 : vector<1x256xi1> to vector<8x256xi1>
    %114 = arith.select %113, %110, %111 : vector<8x256xi1>, vector<8x256xf32>
    %115 = vector.shape_cast %21 : vector<1x256xi1> to vector<1x256xi1>
    %116 = vector.broadcast %115 : vector<1x256xi1> to vector<8x256xi1>
    %117 = arith.select %116, %111, %110 : vector<8x256xi1>, vector<8x256xf32>
    %c240_i32_37 = arith.constant 240 : i32
    %118 = tpu.dynamic_rotate %101 by %c240_i32_37 dim 1 : vector<8x256xf32>, i32 -> vector<8x256xf32>
    %c16_i32_38 = arith.constant 16 : i32
    %119 = tpu.dynamic_rotate %101 by %c16_i32_38 dim 1 : vector<8x256xf32>, i32 -> vector<8x256xf32>
    %120 = vector.shape_cast %19 : vector<1x256xi1> to vector<1x256xi1>
    %121 = vector.broadcast %120 : vector<1x256xi1> to vector<8x256xi1>
    %122 = arith.select %121, %118, %119 : vector<8x256xi1>, vector<8x256xf32>
    %123 = vector.shape_cast %21 : vector<1x256xi1> to vector<1x256xi1>
    %124 = vector.broadcast %123 : vector<1x256xi1> to vector<8x256xi1>
    %125 = arith.select %124, %119, %118 : vector<8x256xi1>, vector<8x256xf32>
    %c240_i32_39 = arith.constant 240 : i32
    %126 = tpu.dynamic_rotate %109 by %c240_i32_39 dim 1 : vector<8x256xf32>, i32 -> vector<8x256xf32>
    %c16_i32_40 = arith.constant 16 : i32
    %127 = tpu.dynamic_rotate %109 by %c16_i32_40 dim 1 : vector<8x256xf32>, i32 -> vector<8x256xf32>
    %128 = vector.shape_cast %19 : vector<1x256xi1> to vector<1x256xi1>
    %129 = vector.broadcast %128 : vector<1x256xi1> to vector<8x256xi1>
    %130 = arith.select %129, %126, %127 : vector<8x256xi1>, vector<8x256xf32>
    %131 = vector.shape_cast %21 : vector<1x256xi1> to vector<1x256xi1>
    %132 = vector.broadcast %131 : vector<1x256xi1> to vector<8x256xi1>
    %133 = arith.select %132, %127, %126 : vector<8x256xi1>, vector<8x256xf32>
    %134 = tpu.concatenate %114, %122, %130, %106, %101, %109, %117, %125, %133 in 0 : vector<8x256xf32>, vector<8x256xf32>, vector<8x256xf32>, vector<8x256xf32>, vector<8x256xf32>, vector<8x256xf32>, vector<8x256xf32>, vector<8x256xf32>, vector<8x256xf32> -> vector<72x256xf32>
    %c0_41 = arith.constant 0 : index
    %c0_42 = arith.constant 0 : index
    %135 = vector.load %arg5[%c0_41, %c0_42] : memref<8x72xbf16, #tpu.memory_space<vmem>>, vector<8x72xbf16>
    %136 = arith.truncf %134 : vector<72x256xf32> to vector<72x256xbf16>
    %cst_43 = arith.constant dense<0.000000e+00> : vector<8x256xf32>
    %137 = tpu.matmul %135, %136, %cst_43 {dimension_numbers = #tpu.dot_dimension_numbers<[1], [0], [0], [1], [0, 0, 1, 1], [], []>} : vector<8x72xbf16>, vector<72x256xbf16>, vector<8x256xf32> -> vector<8x256xf32>
    %c0_44 = arith.constant 0 : index
    %c0_45 = arith.constant 0 : index
    %138 = vector.load %arg6[%c0_44, %c0_45] : memref<8x1xf32, #tpu.memory_space<vmem>>, vector<8x1xf32>
    %139 = vector.broadcast %138 : vector<8x1xf32> to vector<8x256xf32>
    %140 = arith.addf %137, %139 : vector<8x256xf32>
    %cst_46 = arith.constant dense<0.000000e+00> : vector<8xf32>
    %141 = vector.multi_reduction <add>, %140, %cst_46 [1] : vector<8x256xf32> to vector<8xf32>
    %142 = vector.shape_cast %141 : vector<8xf32> to vector<8x1xf32>
    %143 = arith.mulf %140, %140 : vector<8x256xf32>
    %cst_47 = arith.constant dense<0.000000e+00> : vector<8xf32>
    %144 = vector.multi_reduction <add>, %143, %cst_47 [1] : vector<8x256xf32> to vector<8xf32>
    %145 = vector.shape_cast %144 : vector<8xf32> to vector<8x1xf32>
    %cst_48 = arith.constant 3.906250e-03 : f32
    %146 = vector.broadcast %cst_48 : f32 to vector<8x1xf32>
    %147 = arith.mulf %142, %146 : vector<8x1xf32>
    %148 = arith.mulf %142, %147 : vector<8x1xf32>
    %149 = arith.subf %145, %148 : vector<8x1xf32>
    %cst_49 = arith.constant 0.000000e+00 : f32
    %150 = vector.broadcast %cst_49 : f32 to vector<8x1xf32>
    %151 = arith.maximumf %149, %150 : vector<8x1xf32>
    %cst_50 = arith.constant 0.00392156886 : f32
    %152 = vector.broadcast %cst_50 : f32 to vector<8x1xf32>
    %153 = arith.mulf %151, %152 : vector<8x1xf32>
    %cst_51 = arith.constant 9.99999974E-6 : f32
    %154 = vector.broadcast %cst_51 : f32 to vector<8x1xf32>
    %155 = arith.addf %153, %154 : vector<8x1xf32>
    %156 = math.rsqrt %155 : vector<8x1xf32>
    %157 = vector.broadcast %147 : vector<8x1xf32> to vector<8x256xf32>
    %158 = arith.subf %140, %157 : vector<8x256xf32>
    %159 = arith.mulf %156, %37 : vector<8x1xf32>
    %160 = vector.broadcast %159 : vector<8x1xf32> to vector<8x256xf32>
    %161 = arith.mulf %158, %160 : vector<8x256xf32>
    %162 = vector.broadcast %28 : vector<8x1xf32> to vector<8x256xf32>
    %163 = arith.addf %161, %162 : vector<8x256xf32>
    %164 = arith.addf %1, %163 : vector<8x256xf32>
    %165 = vector.extract_strided_slice %164 {offsets = [0, 0], sizes = [4, 256], strides = [1, 1]} : vector<8x256xf32> to vector<4x256xf32>
    %c0_52 = arith.constant 0 : index
    %c0_53 = arith.constant 0 : index
    %c0_54 = arith.constant 0 : index
    %166 = vector.load %arg7[%c0_52, %c0_53, %c0_54] : memref<1x4x256xf32, #tpu.memory_space<vmem>>, vector<1x4x256xf32>
    %167 = vector.shape_cast %166 : vector<1x4x256xf32> to vector<4x256xf32>
    %168 = vector.shape_cast %165 : vector<4x256xf32> to vector<1x4x256xf32>
    tpu.vector_store %arg7[%c0_52, %c0_53, %c0_54], %168 {strides = array<i32>} : memref<1x4x256xf32, #tpu.memory_space<vmem>>, vector<1x4x256xf32>,
    return
  }
  func.func @transform_0(%arg0: i32) -> (i32, i32, i32) {
    %c0_i32 = arith.constant 0 : i32
    %c0_i32_0 = arith.constant 0 : i32
    %c0_i32_1 = arith.constant 0 : i32
    return %arg0, %c0_i32, %c0_i32_0 : i32, i32, i32
  }
  func.func @transform_1(%arg0: i32) -> (i32, i32, i32) {
    %c0_i32 = arith.constant 0 : i32
    %c0_i32_0 = arith.constant 0 : i32
    %c0_i32_1 = arith.constant 0 : i32
    return %arg0, %c0_i32, %c0_i32_0 : i32, i32, i32
  }
  func.func @transform_2(%arg0: i32) -> (i32, i32) {
    %c0_i32 = arith.constant 0 : i32
    %c0_i32_0 = arith.constant 0 : i32
    %c0_i32_1 = arith.constant 0 : i32
    return %c0_i32, %c0_i32_0 : i32, i32
  }
  func.func @transform_3(%arg0: i32) -> (i32, i32) {
    %c0_i32 = arith.constant 0 : i32
    %c0_i32_0 = arith.constant 0 : i32
    %c0_i32_1 = arith.constant 0 : i32
    return %c0_i32, %c0_i32_0 : i32, i32
  }
  func.func @transform_4(%arg0: i32) -> (i32, i32) {
    %c0_i32 = arith.constant 0 : i32
    %c0_i32_0 = arith.constant 0 : i32
    %c0_i32_1 = arith.constant 0 : i32
    return %c0_i32, %c0_i32_0 : i32, i32
  }
  func.func @transform_5(%arg0: i32) -> (i32, i32) {
    %c0_i32 = arith.constant 0 : i32
    %c0_i32_0 = arith.constant 0 : i32
    %c0_i32_1 = arith.constant 0 : i32
    return %c0_i32, %c0_i32_0 : i32, i32
  }
  func.func @transform_6(%arg0: i32) -> (i32, i32, i32) {
    %c0_i32 = arith.constant 0 : i32
    %c0_i32_0 = arith.constant 0 : i32
    %c0_i32_1 = arith.constant 0 : i32
    return %arg0, %c0_i32, %c0_i32_0 : i32, i32, i32
  }
}

</mosaic_0001>

<bundles_post_ra>
// kernel: tpu_custom_call.1
= control target key start
LH: loop header
LB: loop body
LE: loop exit
PB: predicated region body
PF: predicated region fallthrough
CT: control target
= control target key end

     0   :  { %11 = vsyncpa [#allocation3], 0  ;;  %s1594_s0 = inlined_call_operand.hbm [shape: f32[2,8,256], index: 0, kind: input, shape index: {}]   ;;  %s1595_s1 = inlined_call_operand.hbm [shape: f32[2,8,256], index: 1, kind: input, shape index: {}]   ;;  %s1596_s2 = inlined_call_operand.vmem [shape: bf16[8,72], index: 2, kind: input, shape index: {}]   ;;  %s1597_s3 = inlined_call_operand.vmem [shape: f32[8,1], index: 3, kind: input, shape index: {}]   ;;  %s1598_s4 = inlined_call_operand.vmem [shape: bf16[8,72], index: 4, kind: input, shape index: {}]   ;;  %s1599_s5 = inlined_call_operand.vmem [shape: f32[8,1], index: 5, kind: input, shape index: {}]   ;;  %s1600_s6 = inlined_call_operand.hbm [shape: f32[2,4,256], index: 6, kind: output, shape index: {}]  }
   0x1   :  { %13 = vsyncpa [#allocation3 + $0x1], 0 }
   0x2   :  { %14 = vsyncpa [#allocation6], 0 }
   0x3   :  { %16 = vsyncpa [#allocation6 + $0x1], 0 }
   0x4   :  { %17 = vsyncpa [#allocation4], 0 }
   0x5   :  { %19 = vsyncpa [#allocation4 + $0x1], 0  ;;  %s1143_s21 = smov 0   ;;  %s1145_s22 = smov 0  }
   0x6   :  { %s1147_s23 = smov 0   ;;  %s1149_s24 = smov 0  }
   0x7 LB: > { %s1164_s25 = sadd.s32 4294967295, %s1098_s24   ;;  %s800_s26 = sadd.s32 4294967294, %s1098_s24   ;;  %s1098_s24 = sphi %s1149_s24, %s1619_s24   ;;  %s1094_s23 = sphi %s1147_s23, %s1618_s23   ;;  %s1090_s22 = sphi %s1145_s22, %s1617_s22   ;;  %s1086_s21 = sphi %s1143_s21, %s1616_s21  }
   0x8   : > { %s1168_s27 = sadd.s32 1, %s1098_s24   ;;  %s32_s28 = sadd.s32 1, %s1094_s23 }
   0x9   : > { %s29_s29 = ssub.s32 %s1098_s24, %s1168_s27  ;;  %p39_p0 = scmp.ne.s32.totalorder %s1094_s23, %s1090_s22 }
   0xa   : > { %p30_p1 = scmp.eq.s32.totalorder %s29_s29, 0  ;;  %p40_p2 = scmp.eq.s32.totalorder %s1098_s24, 0 }
   0xb   : > { %p45_p3 = scmp.ne.s32.totalorder %s1090_s22, %s1086_s21  ;;  %p46_p4 = scmp.eq.s32.totalorder %s1164_s25, 0 }
   0xc   : > { %s1180_s30 = scalar_select %p30_p1, %s1094_s23, %s32_s28  }
   0xd   : > { %p1182_p5 = por %p40_p2, %p39_p0  ;;  %p1186_p6 = por %p46_p4, %p45_p3 }
   0xe   : > { %p179_p7 = scmp.eq.s32.totalorder %s1164_s25, 1  ;;  %p185_p8 = scmp.eq.s32.totalorder %s800_s26, 1 }
   0xf   : > { %s1604_s8 = scalar_select %p1186_p6, 1, 0 }
  0x10   : > { %p842_p10 = scmp.lt.s32.totalorder %s1098_s24, 2  ;;  %p1193_p11 = por %p179_p7, %p39_p0 }
  0x11   : > { %p1197_p12 = por %p185_p8, %p45_p3  ;;  %s1202_s11 = sand.u32 1, %s1094_s23  }
  0x12   : > { %s1605_s9 = scalar_select %p1193_p11, 1, 0 }
  0x13   : > { %s1606_s10 = scalar_select %p1197_p12, 1, 0 }
  0x14   : > { %s822_s12 = sshll.u32 %s1098_s24, 8  ;;  %s803_s13 = sshll.u32 %s1202_s11, 4 }
  0x15   : > { %s1211_s16 = scalar_lea.hbm %s1594_s0, %s822_s12  ;;  %s221_s17 = scalar_lea.vmem [#allocation2], %s803_s13 }
  0x16   : > { %s229_s18 = sshll.u32 %s221_s17, 4  ;;  %p1217_p13 = pnand %p842_p10, %p1182_p5  ;;  %s1221_s18 = int_to_ptr.vmem [resolvable:$true] %s229_s18 }
  0x17   : > { %s218_s20 = scalar_lea.sflag [#allocation3], %s1202_s11  ;;  %s968_s26 = scalar_lea.hbm %s1211_s16, 256 }
  0x18   : > { %p969_p2 = scmp.ne.s32.totalorder %s1211_s16, %s968_s26  ;;  %p970_p3 = pneg %p1217_p13 }
  0x19   : > { %s973_s7 = scalar_lea.hbm %s1594_s0, 512  ;;  %p974_p5 = scmp.lt.u32.totalorder %s1211_s16, %s1594_s0 }
  0x1a   : > { %p971_p4 = pnand %p970_p3, %p969_p2  ;;  %p975_p8 = scmp.lt.u32.totalorder %s973_s7, %s968_s26 }
  0x1b   : > { %p977_p9 = scmp.lt.u32.totalorder %s968_s26, %s1211_s16 }
  0x1c   : > { %p972_p7 = pneg %p971_p4  ;;  %p976_p10 = por %p975_p8, %p974_p5 }
  0x1e   : > { %p978_p0 = por %p977_p9, %p976_p10 }
  0x20   : > { %p979_p1 = pnand %p978_p0, %p972_p7 }
  0x22   : > { %982 = shalt.err (!%p979_p1)
}
  0x23   : > { %s983_s17 = scalar_lea.vmem %s1221_s18, 256  ;;  %s1100_s28 = smov [#allocation2]  }
  0x24   : > { %p984_p2 = scmp.ne.s32.totalorder %s1221_s18, %s983_s17  ;;  %s988_s29 = sshll.u32 %s1100_s28, 4  ;;  %s989_s29 = int_to_ptr.vmem [resolvable:$false] %s988_s29 }
  0x25   : > { %s990_s14 = scalar_lea.vmem %s989_s29, 512  ;;  %p991_p11 = scmp.lt.s32.totalorder %s1221_s18, %s989_s29 }
  0x26   : > { %p986_p4 = pnand %p984_p2, %p970_p3  ;;  %p992_p5 = scmp.lt.s32.totalorder %s990_s14, %s983_s17 }
  0x28   : > { %p987_p12 = pneg %p986_p4  ;;  %p993_p8 = por %p992_p5, %p991_p11 }
  0x2a   : > { %p994_p9 = pnand %p993_p8, %p987_p12 }
  0x2c   : > { %997 = shalt.err (!%p994_p9)
}
  0x2d   : > { %834 = dma.hbm_to_vmem [thread:$0]  (!%p1217_p13), %s1211_s16, 256, %s1221_s18, %s218_s20  }
  0x2e   : > { %p1608_p0 = scmp.lt.s32.totalorder %s1098_s24, 3  ;;  %p1609_p1 = scmp.ge.s32.totalorder %s1098_s24, 1 }
  0x2f   : > { %s1264_s17 = scalar_lea.hbm %s1595_s1, %s822_s12  ;;  %s240_s28 = scalar_lea.vmem [#allocation5], %s803_s13 }
  0x30   : > { %p1255_p7 = pnand %p1609_p1, %p1608_p0  ;;  %s248_s29 = sshll.u32 %s240_s28, 4  ;;  %s249_s29 = int_to_ptr.vmem [resolvable:$true] %s248_s29 }
  0x31   : > { %s237_s16 = scalar_lea.sflag [#allocation6], %s1202_s11  ;;  %s998_s18 = scalar_lea.hbm %s1264_s17, 256 }
  0x32   : > { %s1610_s26 = scalar_select %p1255_p7, 1, 0 }
  0x33   : > { %p999_p11 = scmp.ne.s32.totalorder %s1264_s17, %s998_s18  ;;  %s1003_s12 = scalar_lea.hbm %s1595_s1, 512 }
  0x34   : > { %p1004_p2 = scmp.lt.u32.totalorder %s1264_s17, %s1595_s1  ;;  %p1005_p4 = scmp.lt.u32.totalorder %s1003_s12, %s998_s18 }
  0x35   : > { %p1001_p12 = pnand %p999_p11, %p970_p3  ;;  %p1007_p8 = scmp.lt.u32.totalorder %s998_s18, %s1264_s17 }
  0x36   : > { %p1006_p5 = por %p1005_p4, %p1004_p2 }
  0x37   : > { %p1002_p10 = pneg %p1001_p12 }
  0x38   : > { %p1008_p9 = por %p1007_p8, %p1006_p5 }
  0x3a   : > { %p1009_p0 = pnand %p1008_p9, %p1002_p10 }
  0x3c   : > { %1012 = shalt.err (!%p1009_p0)
}
  0x3d   : > { %s1013_s11 = scalar_lea.vmem %s249_s29, 256  ;;  %s1101_s13 = smov [#allocation5]  }
  0x3e   : > { %p1014_p1 = scmp.ne.s32.totalorder %s249_s29, %s1013_s11  ;;  %s1018_s28 = sshll.u32 %s1101_s13, 4  ;;  %s1019_s28 = int_to_ptr.vmem [resolvable:$false] %s1018_s28 }
  0x3f   : > { %s1020_s20 = scalar_lea.vmem %s1019_s28, 512  ;;  %p1021_p6 = scmp.lt.s32.totalorder %s249_s29, %s1019_s28 }
  0x40   : > { %p1016_p11 = pnand %p1014_p1, %p970_p3  ;;  %p1022_p7 = scmp.lt.s32.totalorder %s1020_s20, %s1013_s11 }
  0x42   : > { %p1017_p12 = pneg %p1016_p11  ;;  %p1023_p2 = por %p1022_p7, %p1021_p6 }
  0x44   : > { %p1024_p4 = pnand %p1023_p2, %p1017_p12 }
  0x46   : > { %1027 = shalt.err (!%p1024_p4)
}
  0x47   : > { %837 = dma.hbm_to_vmem [thread:$0]  (!%p1217_p13), %s1264_s17, 256, %s249_s29, %s237_s16  }
  0x48   : > { %p1611_p10 = scmp.ne.s32.totalorder %s1610_s26, 0 }
  0x49   : > { %s1291_s18 = sand.u32 (!%p1611_p10), 1, %s1090_s22   ;;  %p1612_p3 = scmp.ne.s32.totalorder (!%p1611_p10), %s1604_s8, 0 }
  0x4a   : > { %257 = sbr.rel (%p1611_p10) target bundleno = 1421 (0x58d), region = 44  ;;  %s810_s14 = sshll.u32 (!%p1611_p10), %s1291_s18, 4 }
  0x4b   : > { %s260_s12 = scalar_lea.sflag (!%p1611_p10), [#allocation3], %s1291_s18  ;;  %s263_s7 = scalar_lea.vmem (!%p1611_p10), [#allocation2], %s810_s14 }
  0x51   : > { %1073 = dma.done.wait (%p1612_p3), %s260_s12, 256  }
  0x52   : > { %1075 = vsyncadd (%p1612_p3), %s260_s12, 4294967040  ;;  %s269_s19 = scalar_lea.sflag [#allocation6], %s1291_s18  ;;  %s1300_s17 = scalar_lea.vmem [#allocation5], %s810_s14 }
  0x53   : > { %1077 = dma.done.wait (%p1612_p3), %s269_s19, 256  }
  0x54   : > { %1079 = vsyncadd (%p1612_p3), %s269_s19, 4294967040  ;;  %v1306_v0 = vld [vmem:[%s263_s7] sm:$0xff]  ;;  %v1308_v1 = vld [vmem:[%s263_s7 + $0x8] sm:$0xff]  ;;  %s1102_s26 = smov 127   ;;  %s1103_s29 = smov 16   ;;  %v311_v3 = vlaneseq  ;;  %v1106_v34 = vmov 0  }
  0x55   : > { %v881_v2 = vpack.i.bf16 %v1308_v1, %v1306_v0  ;;  %s1104_s16 = smov 1   ;;  %s1105_s15 = smov 112   ;;  %499 = vmatprep.mubr.bf16.mxu0 %v1106_v34  ;;  %921 = vset.pattern.permute.xlu0 %v1106_v34  ;;  %v450_v35 = vld [vmem:[%s1597_s3] sm:$0xff]  ;;  %v310_v37 = vld [vmem:[%s1300_s17 + $0x8] sm:$0xff]  ;;  %vm460_vm12 = vcmask 1043456   ;;  %vm456_vm13 = vcmask 588800  }
  0x56   : > { %v1316_v4 = vand.u32 127, %v311_v3  ;;  %654 = vmatprep.mubr.bf16.mxu1 %v1106_v34  ;;  %v309_v36 = vld [vmem:[%s1300_s17] sm:$0xff]  ;;  %v338_v40 = vmul.f32 %v310_v37, %v310_v37  ;;  %s812_s19 = sshll.u32 %s1291_s18, 3  ;;  %s824_s17 = sshll.u32 %s1164_s25, 7 }
  0x57   : > { %882 = vrot.lane.b32.xlu0 %v881_v2, %s1102_s26  ;;  %897 = vrot.lane.b32.xlu1 %v881_v2, %s1103_s29  ;;  %v334_v38 = vadd.f32 %v310_v37, %v309_v36  ;;  %v337_v39 = vmul.f32 %v309_v36, %v309_v36  ;;  %s1550_s8 = scalar_lea.hbm %s1600_s6, %s824_s17  ;;  %s693_s11 = scalar_lea.sflag [#allocation4], %s1291_s18 }
  0x58   : > { %v313_v5 = vadd.s32 128, %v1316_v4  ;;  %v314_v6 = vcvt.s32.f32 %v1316_v4  ;;  %vm359_vm0 = vcmp.lt.s32.totalorder %v1316_v4, 127  ;;  %vm366_vm1 = vcmp.lt.s32.totalorder %v1316_v4, 1  ;;  %p1613_p13 = scmp.ne.s32.totalorder %s1605_s9, 0  ;;  %s1107_s13 = smov [#allocation7]  }
  0x59   : > { %v339_v41 = vadd.f32 %v338_v40, %v337_v39  ;;  %vm392_vm6 = vcmp.lt.s32.totalorder %v1316_v4, 16  ;;  %vm385_vm7 = vcmp.lt.s32.totalorder %v1316_v4, 112  ;;  %s1032_s28 = sshll.u32 %s1107_s13, 4  ;;  %s1033_s28 = int_to_ptr.vmem [resolvable:$false] %s1032_s28 }
  0x5a   : > { %v315_v7 = vcvt.s32.f32 %v313_v5  ;;  %v316_v8 = vadd.f32 0.5, %v314_v6  ;;  %s1034_s20 = scalar_lea.vmem %s1033_s28, 256 }
  0x5b   : > { %887 = vrot.lane.b32.xlu0 %v881_v2, %s1104_s16 }
  0x5c   : > { %v317_v9 = vadd.f32 0.5, %v315_v7  ;;  %v318_v10 = vmul.f32 0.0625, %v316_v8 }
  0x5e   : > { %v319_v11 = vmul.f32 0.0625, %v317_v9  ;;  %v1320_v12 = vfloor.f32 %v318_v10 }
  0x5f   : > { %892 = vrot.lane.b32.xlu0 %v881_v2, %s1105_s15 }
  0x60   : > { %v1322_v13 = vfloor.f32 %v319_v11  ;;  %v322_v14 = vmul.f32 16.0, %v1320_v12  ;;  %vm330_vm9 = vcmp.lt.f32.partialorder %v1320_v12, 0.5  ;;  %vm332_vm11 = vcmp.gt.f32.partialorder %v1320_v12, 14.5 }
  0x62   : > { %v323_v15 = vmul.f32 16.0, %v1322_v13  ;;  %v1326_v17 = vsub.f32 %v314_v6, %v322_v14  ;;  %vm331_vm8 = vcmp.lt.f32.partialorder %v1322_v13, 0.5  ;;  %vm333_vm10 = vcmp.gt.f32.partialorder %v1322_v13, 14.5  ;;  %v596_v13 = vld [vmem:[%s1598_s4] sm:$0xf] }
  0x64   : > { %v1328_v18 = vsub.f32 %v315_v7, %v323_v15  ;;  %vm328_vm2 = vcmp.gt.f32.partialorder %v1326_v17, 14.5  ;;  %vm326_vm3 = vcmp.lt.f32.partialorder %v1326_v17, 0.5 }
  0x66   : > { %vm329_vm4 = vcmp.gt.f32.partialorder %v1328_v18, 14.5  ;;  %vm327_vm5 = vcmp.lt.f32.partialorder %v1328_v18, 0.5 }
  0xc9   : > { %v883_v16 = vpop.permute.xlu0 %882  ;;  %v898_v42 = vpop.permute.xlu1 %897 }
  0xca   : > { %v885_v19 = vunpack.i.h.bf16 %v883_v16  ;;  %v884_v20 = vunpack.i.l.bf16 %v883_v16  ;;  %v900_v44 = vunpack.i.h.bf16 %v898_v42  ;;  %v899_v45 = vunpack.i.l.bf16 %v898_v42 }
  0xcc   : > { %v360_v24 = vsel %vm359_vm0, %v884_v20, %v885_v19  ;;  %v361_v25 = vsel %vm359_vm0, %v885_v19, %v884_v20  ;;  %v417_v53 = vsel %vm392_vm6, %v899_v45, %v900_v44  ;;  %v418_v54 = vsel %vm392_vm6, %v900_v44, %v899_v45 }
  0xcd   : > { %v888_v21 = vpop.permute.xlu0 %887 }
  0xce   : > { %v890_v22 = vunpack.i.h.bf16 %v888_v21  ;;  %v889_v23 = vunpack.i.l.bf16 %v888_v21 }
  0xd0   : > { %v367_v26 = vsel %vm366_vm1, %v889_v23, %v890_v22  ;;  %v368_v27 = vsel %vm366_vm1, %v890_v22, %v889_v23 }
  0xd1   : > { %v1346_v28 = vsel %vm328_vm2, %v368_v27, %v360_v24  ;;  %v1350_v29 = vsel %vm329_vm4, %v367_v26, %v361_v25  ;;  %v1354_v30 = vsel %vm326_vm3, %v360_v24, %v368_v27  ;;  %v1358_v31 = vsel %vm327_vm5, %v361_v25, %v367_v26  ;;  %v893_v43 = vpop.permute.xlu0 %892 }
  0xd2   : > { %v911_v32 = vpack.i.bf16 %v1350_v29, %v1346_v28  ;;  %v901_v33 = vpack.i.bf16 %v1358_v31, %v1354_v30  ;;  %v895_v47 = vunpack.i.h.bf16 %v893_v43  ;;  %v894_v48 = vunpack.i.l.bf16 %v893_v43 }
  0xd3   : > { %v445_v25 = vpack.c.bf16 %v1350_v29, %v1308_v1  ;;  %v444_v27 = vpack.c.bf16 %v1346_v28, %v1306_v0 }
  0xd4   : > { %912 = vrot.lane.b32.xlu0 %v911_v32, %s1105_s15  ;;  %902 = vrot.lane.b32.xlu1 %v901_v33, %s1105_s15  ;;  %v412_v57 = vsel %vm385_vm7, %v895_v47, %v894_v48  ;;  %v411_v58 = vsel %vm385_vm7, %v894_v48, %v895_v47 }
  0xd5   : > { %v420_v6 = vsel %vm331_vm8, %v412_v57, %v417_v53  ;;  %v419_v8 = vsel %vm330_vm9, %v411_v58, %v418_v54  ;;  %v421_v28 = vsel %vm332_vm11, %v418_v54, %v411_v58 }
  0xd8   : > { %907 = vrot.lane.b32.xlu1 %v901_v33, %s1103_s29  ;;  %453 = vperm.xlu0 %921, %v450_v35  }
  0xdc   : > { %917 = vrot.lane.b32.xlu1 %v911_v32, %s1103_s29  ;;  %v422_v32 = vsel %vm333_vm10, %v417_v53, %v412_v57 }
  0xf7   : > { %340 = vadd.xlane.f32.xlu0 %v339_v41 }
 0x100   : > { %335 = vadd.xlane.f32.xlu1 %v334_v38  ;;  %v439_v38 = vld [vmem:[%s1596_s2] sm:$0xf] }
 0x146   : > { %v903_v46 = vpop.permute.xlu1 %902  ;;  %v913_v49 = vpop.permute.xlu0 %912 }
 0x147   : > { %v905_v50 = vunpack.i.h.bf16 %v903_v46  ;;  %v904_v51 = vunpack.i.l.bf16 %v903_v46  ;;  %v915_v59 = vunpack.i.h.bf16 %v913_v49  ;;  %v914_v60 = vunpack.i.l.bf16 %v913_v49 }
 0x149   : > { %v387_v61 = vsel %vm385_vm7, %v905_v50, %v904_v51  ;;  %v386_v63 = vsel %vm385_vm7, %v904_v51, %v905_v50  ;;  %v427_v15 = vsel %vm385_vm7, %v914_v60, %v915_v59  ;;  %v428_v16 = vsel %vm385_vm7, %v915_v59, %v914_v60 }
 0x14a   : > { %v908_v52 = vpop.permute.xlu1 %907 }
 0x14b   : > { %v910_v55 = vunpack.i.h.bf16 %v908_v52  ;;  %v909_v56 = vunpack.i.l.bf16 %v908_v52 }
 0x14d   : > { %v393_v62 = vsel %vm392_vm6, %v909_v56, %v910_v55  ;;  %v394_v2 = vsel %vm392_vm6, %v910_v55, %v909_v56 }
 0x14e   : > { %v918_v3 = vpop.permute.xlu1 %917  ;;  %v400_v5 = vsel %vm331_vm8, %v387_v61, %v393_v62  ;;  %v399_v7 = vsel %vm330_vm9, %v386_v63, %v394_v2  ;;  %v406_v26 = vsel %vm333_vm10, %v393_v62, %v387_v61 }
 0x14f   : > { %v920_v9 = vunpack.i.h.bf16 %v918_v3  ;;  %v919_v10 = vunpack.i.l.bf16 %v918_v3  ;;  %v441_v11 = vpack.c.bf16 %v420_v6, %v400_v5  ;;  %v440_v14 = vpack.c.bf16 %v419_v8, %v399_v7 }
 0x151   : > { %v433_v19 = vsel %vm392_vm6, %v919_v10, %v920_v9  ;;  %v434_v20 = vsel %vm392_vm6, %v920_v9, %v919_v10  ;;  %467 = vmatprep.subr.bf16.mxu0 %v441_v11 }
 0x152   : > { %468 = vmatpush1.bf16.msra.mxu0 %v440_v14  ;;  %v436_v21 = vsel %vm331_vm8, %v428_v16, %v433_v19  ;;  %v435_v22 = vsel %vm330_vm9, %v427_v15, %v434_v20  ;;  %v438_v29 = vsel %vm333_vm10, %v433_v19, %v428_v16  ;;  %v437_v33 = vsel %vm332_vm11, %v434_v20, %v427_v15 }
 0x153   : > { %v443_v23 = vpack.c.bf16 %v1358_v31, %v436_v21  ;;  %v442_v24 = vpack.c.bf16 %v1354_v30, %v435_v22  ;;  %v447_v30 = vpack.c.bf16 %v422_v32, %v406_v26  ;;  %v405_v31 = vsel %vm332_vm11, %v394_v2, %v386_v63 }
 0x154   : > { %v446_v34 = vpack.c.bf16 %v421_v28, %v405_v31  ;;  %v449_v35 = vpack.c.bf16 %v438_v29, %v438_v29  ;;  %v448_v36 = vpack.c.bf16 %v437_v33, %v437_v33 }
 0x155   : > { %469 = vmatprep.subr.bf16.mxu0 %v443_v23 }
 0x156   : > { %470 = vmatpush1.bf16.msra.mxu0 %v442_v24  ;;  %v462_v37 = vsel %vm460_vm12, %v448_v36, 0 }
 0x157   : > { %471 = vmatprep.subr.bf16.mxu0 %v445_v25  ;;  %v454_v39 = vpop.permute.xlu0 %453 }
 0x15a   : > { %472 = vmatpush1.bf16.msra.mxu0 %v444_v27 }
 0x15b   : > { %473 = vmatprep.subr.bf16.mxu0 %v447_v30 }
 0x15e   : > { %474 = vmatpush1.bf16.msra.mxu0 %v446_v34 }
 0x15f   : > { %813 = vmatprep.subr.msk.bf16.mxu0 %vm460_vm12, %v449_v35 }
 0x162   : > { %476 = vmatpush1.bf16.msra.mxu0 %v462_v37 }
 0x165   : > { %814 = vmatmul.mubr.msk.bf16.vlgmr.msra.gmra.mrb[0].mxu0 %vm456_vm13, %v439_v38 }
 0x184   : > { %v341_v55 = vpop.xlane.xlu0 %340 }
 0x18d   : > { %v336_v52 = vpop.xlane.xlu1 %335 }
 0x18e   : > { %v1439_v53 = vmul.f32 0.00390625, %v336_v52 }
 0x190   : > { %v343_v54 = vmul.f32 %v1439_v53, %v336_v52 }
 0x192   : > { %v344_v56 = vsub.f32 %v341_v55, %v343_v54 }
 0x194   : > { %v345_v57 = vmax.f32 %v344_v56, 0.0 }
 0x196   : > { %v346_v58 = vmul.f32 0.003921569, %v345_v57 }
 0x198   : > { %v347_v59 = vadd.f32 1e-05, %v346_v58 }
 0x19a   : > { %962 = vrsqrt.f32 %v347_v59  ;;  %vm350_vm14 = vcmp.eq.f32.partialorder %v347_v59, inf  ;;  %v353_v9 = vand.u32 2147483648, %v347_v59  ;;  %vm352_vm15 = vcmp.eq.f32.partialorder %v347_v59, 0.0 }
 0x1a4   : > { %v963_v7 = vpop.eup %962 }
 0x1a5   : > { %v349_v8 = vmul.f32 %v963_v7, %v347_v59 }
 0x1a7   : > { %v351_v10 = vsel %vm350_vm14, %v347_v59, %v349_v8 }
 0x1a8   : > { %v1442_v14 = vsel %vm352_vm15, %v353_v9, %v351_v10 }
 0x238   : > { %v501_v40 = vpop.f32.mrb[0].mxu0 }
 0x239   : > { %v502_v41 = vadd.f32 %v501_v40, %v454_v39  ;;  %v503_v42 = vpop.f32.mrb[1].mxu0 }
 0x23a   : > { %v504_v43 = vadd.f32 %v503_v42, %v454_v39  ;;  %v505_v44 = vpop.f32.mrb[2].mxu0 }
 0x23b   : > { %v508_v45 = vmax.f32 %v502_v41, 0.0  ;;  %v506_v46 = vpop.f32.mrb[3].mxu0  ;;  %v607_v41 = vld [vmem:[%s1599_s5] sm:$0xff] }
 0x23c   : > { %v509_v47 = vmax.f32 %v504_v43, 0.0 }
 0x23d   : > { %v513_v48 = vmul.f32 %v508_v45, %v508_v45 }
 0x23e   : > { %v510_v49 = vadd.f32 %v509_v47, %v508_v45  ;;  %v514_v50 = vmul.f32 %v509_v47, %v509_v47 }
 0x240   : > { %511 = vadd.xlane.f32.xlu1 %v510_v49  ;;  %v515_v51 = vadd.f32 %v514_v50, %v513_v48 }
 0x242   : > { %516 = vadd.xlane.f32.xlu0 %v515_v51 }
 0x2cd   : > { %v512_v60 = vpop.xlane.xlu1 %511 }
 0x2ce   : > { %v518_v61 = vmul.f32 0.00390625, %v512_v60 }
 0x2cf   : > { %v517_v63 = vpop.xlane.xlu0 %516 }
 0x2d0   : > { %v519_v62 = vmul.f32 %v518_v61, %v512_v60  ;;  %v525_v15 = vsub.f32 %v508_v45, %v518_v61  ;;  %v526_v16 = vsub.f32 %v509_v47, %v518_v61 }
 0x2d2   : > { %v520_v2 = vsub.f32 %v517_v63, %v519_v62 }
 0x2d4   : > { %v521_v3 = vmax.f32 %v520_v2, 0.0 }
 0x2d6   : > { %v522_v5 = vmul.f32 0.003921569, %v521_v3 }
 0x2d8   : > { %v523_v6 = vadd.f32 1e-05, %v522_v5 }
 0x2da   : > { %964 = vrsqrt.f32 %v523_v6 }
 0x2e4   : > { %v965_v11 = vpop.eup %964 }
 0x2e5   : > { %v527_v19 = vmul.f32 %v965_v11, %v1442_v14 }
 0x2e7   : > { %v528_v20 = vmul.f32 %v527_v19, %v525_v15  ;;  %v529_v21 = vmul.f32 %v527_v19, %v526_v16 }
 0x2e9   : > { %v1446_v22 = vadd.f32 %v528_v20, %v1439_v53  ;;  %v1449_v23 = vadd.f32 %v529_v21, %v1439_v53 }
 0x2eb   : > { %v927_v24 = vpack.i.bf16 %v1449_v23, %v1446_v22 }
 0x2ed   : > { %928 = vrot.lane.b32.xlu0 %v927_v24, %s1104_s16  ;;  %923 = vrot.lane.b32.xlu1 %v927_v24, %s1102_s26  ;;  %s305_s26 = scalar_lea.vmem [#allocation7], %s812_s19 }
 0x2f1   : > { %933 = vrot.lane.b32.xlu0 %v927_v24, %s1105_s15  ;;  %938 = vrot.lane.b32.xlu1 %v927_v24, %s1103_s29 }
 0x35f   : > { %v929_v25 = vpop.permute.xlu0 %928  ;;  %v924_v26 = vpop.permute.xlu1 %923 }
 0x360   : > { %v931_v27 = vunpack.i.h.bf16 %v929_v25  ;;  %v930_v32 = vunpack.i.l.bf16 %v929_v25  ;;  %v926_v30 = vunpack.i.h.bf16 %v924_v26  ;;  %v925_v31 = vunpack.i.l.bf16 %v924_v26 }
 0x362   : > { %v542_v29 = vsel %vm366_vm1, %v930_v32, %v931_v27  ;;  %v543_v33 = vsel %vm366_vm1, %v931_v27, %v930_v32  ;;  %v536_v28 = vsel %vm359_vm0, %v925_v31, %v926_v30  ;;  %v537_v34 = vsel %vm359_vm0, %v926_v30, %v925_v31 }
 0x363   : > { %v1467_v35 = vsel %vm328_vm2, %v543_v33, %v536_v28  ;;  %v547_v36 = vsel %vm329_vm4, %v542_v29, %v537_v34  ;;  %v544_v37 = vsel %vm326_vm3, %v536_v28, %v543_v33  ;;  %v545_v38 = vsel %vm327_vm5, %v537_v34, %v542_v29  ;;  %v939_v17 = vpop.permute.xlu1 %938  ;;  %v934_v42 = vpop.permute.xlu0 %933 }
 0x364   : > { %v952_v39 = vpack.i.bf16 %v547_v36, %v1467_v35  ;;  %v942_v40 = vpack.i.bf16 %v545_v38, %v544_v37  ;;  %v936_v18 = vunpack.i.h.bf16 %v934_v42  ;;  %v935_v43 = vunpack.i.l.bf16 %v934_v42 }
 0x365   : > { %v941_v44 = vunpack.i.h.bf16 %v939_v17  ;;  %v940_v45 = vunpack.i.l.bf16 %v939_v17  ;;  %v602_v27 = vpack.c.bf16 %v547_v36, %v1449_v23  ;;  %v601_v4 = vpack.c.bf16 %v1467_v35, %v1446_v22 }
 0x366   : > { %953 = vrot.lane.b32.xlu0 %v952_v39, %s1105_s15  ;;  %943 = vrot.lane.b32.xlu1 %v942_v40, %s1105_s15  ;;  %v569_v51 = vsel %vm385_vm7, %v936_v18, %v935_v43  ;;  %v568_v56 = vsel %vm385_vm7, %v935_v43, %v936_v18 }
 0x367   : > { %v574_v52 = vsel %vm392_vm6, %v940_v45, %v941_v44  ;;  %v575_v57 = vsel %vm392_vm6, %v941_v44, %v940_v45 }
 0x368   : > { %v577_v5 = vsel %vm331_vm8, %v569_v51, %v574_v52  ;;  %v576_v7 = vsel %vm330_vm9, %v568_v56, %v575_v57  ;;  %v579_v30 = vsel %vm333_vm10, %v574_v52, %v569_v51  ;;  %v578_v28 = vsel %vm332_vm11, %v575_v57, %v568_v56 }
 0x36a   : > { %610 = vperm.xlu0 %921, %v607_v41   ;;  %948 = vrot.lane.b32.xlu1 %v942_v40, %s1103_s29 }
 0x36e   : > { %958 = vrot.lane.b32.xlu1 %v952_v39, %s1103_s29  ;;  %s707_s29 = sshll.u32 %s305_s26, 4  ;;  %s1552_s29 = int_to_ptr.vmem [resolvable:$true] %s707_s29 }
 0x36f   : > { %s1028_s25 = scalar_lea.vmem %s1552_s29, 128  ;;  %p1035_p8 = scmp.lt.s32.totalorder %s1552_s29, %s1033_s28 }
 0x370   : > { %p1029_p6 = scmp.ne.s32.totalorder %s1552_s29, %s1028_s25  ;;  %p1036_p9 = scmp.lt.s32.totalorder %s1034_s20, %s1028_s25 }
 0x372   : > { %p1030_p7 = pnand %p1029_p6, %p1613_p13  ;;  %p1037_p0 = por %p1036_p9, %p1035_p8 }
 0x374   : > { %p1031_p5 = pneg %p1030_p7 }
 0x376   : > { %p1038_p1 = pnand %p1037_p0, %p1031_p5 }
 0x3d8   : > { %v944_v46 = vpop.permute.xlu1 %943  ;;  %v954_v47 = vpop.permute.xlu0 %953 }
 0x3d9   : > { %v946_v48 = vunpack.i.h.bf16 %v944_v46  ;;  %v945_v49 = vunpack.i.l.bf16 %v944_v46  ;;  %v956_v58 = vunpack.i.h.bf16 %v954_v47  ;;  %v955_v59 = vunpack.i.l.bf16 %v954_v47 }
 0x3db   : > { %v553_v60 = vsel %vm385_vm7, %v946_v48, %v945_v49  ;;  %v552_v62 = vsel %vm385_vm7, %v945_v49, %v946_v48  ;;  %v584_v15 = vsel %vm385_vm7, %v955_v59, %v956_v58  ;;  %v585_v16 = vsel %vm385_vm7, %v956_v58, %v955_v59 }
 0x3dc   : > { %v949_v50 = vpop.permute.xlu1 %948 }
 0x3dd   : > { %v951_v54 = vunpack.i.h.bf16 %v949_v50  ;;  %v950_v55 = vunpack.i.l.bf16 %v949_v50 }
 0x3df   : > { %v558_v61 = vsel %vm392_vm6, %v950_v55, %v951_v54  ;;  %v559_v63 = vsel %vm392_vm6, %v951_v54, %v950_v55 }
 0x3e0   : > { %v959_v2 = vpop.permute.xlu1 %958  ;;  %v561_v3 = vsel %vm331_vm8, %v553_v60, %v558_v61  ;;  %v560_v6 = vsel %vm330_vm9, %v552_v62, %v559_v63  ;;  %v563_v32 = vsel %vm333_vm10, %v558_v61, %v553_v60  ;;  %v562_v29 = vsel %vm332_vm11, %v559_v63, %v552_v62 }
 0x3e1   : > { %v961_v8 = vunpack.i.h.bf16 %v959_v2  ;;  %v960_v9 = vunpack.i.l.bf16 %v959_v2  ;;  %v598_v10 = vpack.c.bf16 %v577_v5, %v561_v3  ;;  %v597_v11 = vpack.c.bf16 %v576_v7, %v560_v6 }
 0x3e2   : > { %v604_v31 = vpack.c.bf16 %v579_v30, %v563_v32  ;;  %v603_v34 = vpack.c.bf16 %v578_v28, %v562_v29 }
 0x3e3   : > { %v590_v19 = vsel %vm392_vm6, %v960_v9, %v961_v8  ;;  %v591_v20 = vsel %vm392_vm6, %v961_v8, %v960_v9  ;;  %622 = vmatprep.subr.bf16.mxu1 %v598_v10 }
 0x3e4   : > { %623 = vmatpush1.bf16.msra.mxu1 %v597_v11  ;;  %v593_v21 = vsel %vm331_vm8, %v585_v16, %v590_v19  ;;  %v592_v24 = vsel %vm330_vm9, %v584_v15, %v591_v20  ;;  %v595_v33 = vsel %vm333_vm10, %v590_v19, %v585_v16  ;;  %v594_v23 = vsel %vm332_vm11, %v591_v20, %v584_v15 }
 0x3e5   : > { %v600_v25 = vpack.c.bf16 %v545_v38, %v593_v21  ;;  %v599_v26 = vpack.c.bf16 %v544_v37, %v592_v24  ;;  %v606_v22 = vpack.c.bf16 %v595_v33, %v595_v33  ;;  %v605_v35 = vpack.c.bf16 %v594_v23, %v594_v23 }
 0x3e7   : > { %624 = vmatprep.subr.bf16.mxu1 %v600_v25  ;;  %v617_v36 = vsel %vm460_vm12, %v605_v35, 0 }
 0x3e8   : > { %625 = vmatpush1.bf16.msra.mxu1 %v599_v26 }
 0x3e9   : > { %626 = vmatprep.subr.bf16.mxu1 %v602_v27  ;;  %v611_v37 = vpop.permute.xlu0 %610 }
 0x3ec   : > { %627 = vmatpush1.bf16.msra.mxu1 %v601_v4 }
 0x3ed   : > { %628 = vmatprep.subr.bf16.mxu1 %v604_v31 }
 0x3f0   : > { %629 = vmatpush1.bf16.msra.mxu1 %v603_v34 }
 0x3f1   : > { %815 = vmatprep.subr.msk.bf16.mxu1 %vm460_vm12, %v606_v22 }
 0x3f4   : > { %631 = vmatpush1.bf16.msra.mxu1 %v617_v36 }
 0x3f7   : > { %816 = vmatmul.mubr.msk.bf16.vlgmr.msra.gmra.mrb[0].mxu1 %vm456_vm13, %v596_v13 }
 0x4ca   : > { %v656_v38 = vpop.f32.mrb[0].mxu1 }
 0x4cb   : > { %v657_v39 = vadd.f32 %v656_v38, %v611_v37  ;;  %v658_v12 = vpop.f32.mrb[1].mxu1 }
 0x4cc   : > { %v659_v40 = vadd.f32 %v658_v12, %v611_v37  ;;  %v660_v41 = vpop.f32.mrb[2].mxu1 }
 0x4cd   : > { %v661_v17 = vpop.f32.mrb[3].mxu1  ;;  %v666_v42 = vmul.f32 %v657_v39, %v657_v39 }
 0x4ce   : > { %v663_v18 = vadd.f32 %v659_v40, %v657_v39  ;;  %v667_v43 = vmul.f32 %v659_v40, %v659_v40 }
 0x4d0   : > { %664 = vadd.xlane.f32.xlu1 %v663_v18  ;;  %v668_v44 = vadd.f32 %v667_v43, %v666_v42 }
 0x4d2   : > { %669 = vadd.xlane.f32.xlu0 %v668_v44 }
 0x55d   : > { %v665_v45 = vpop.xlane.xlu1 %664 }
 0x55e   : > { %v671_v46 = vmul.f32 0.00390625, %v665_v45 }
 0x55f   : > { %v670_v48 = vpop.xlane.xlu0 %669 }
 0x560   : > { %v672_v47 = vmul.f32 %v671_v46, %v665_v45  ;;  %v678_v55 = vsub.f32 %v657_v39, %v671_v46  ;;  %v679_v56 = vsub.f32 %v659_v40, %v671_v46 }
 0x562   : > { %v673_v49 = vsub.f32 %v670_v48, %v672_v47 }
 0x564   : > { %v674_v50 = vmax.f32 %v673_v49, 0.0 }
 0x566   : > { %v675_v51 = vmul.f32 0.003921569, %v674_v50 }
 0x568   : > { %v676_v52 = vadd.f32 1e-05, %v675_v51 }
 0x56a   : > { %966 = vrsqrt.f32 %v676_v52 }
 0x574   : > { %v967_v54 = vpop.eup %966 }
 0x575   : > { %v680_v57 = vmul.f32 %v967_v54, %v1442_v14 }
 0x577   : > { %v681_v58 = vmul.f32 %v680_v57, %v678_v55  ;;  %v682_v59 = vmul.f32 %v680_v57, %v679_v56 }
 0x579   : > { %v683_v60 = vadd.f32 %v681_v58, %v1439_v53  ;;  %v684_v61 = vadd.f32 %v682_v59, %v1439_v53 }
 0x57b   : > { %v685_v62 = vadd.f32 %v683_v60, %v1306_v0  ;;  %v686_v63 = vadd.f32 %v684_v61, %v1308_v1 }
 0x57d   : > { %v689_v2 = vcombine.low %v685_v62, %v686_v63 }
 0x57f   : > { %691 = vst [vmem:[%s305_s26] sm:$0xff] %v689_v2 }
 0x580   : > { %1041 = shalt.err (!%p1038_p1)
}
 0x581   : > { %s1042_s18 = scalar_lea.hbm %s1550_s8, 128  ;;  %s1046_s7 = scalar_lea.hbm %s1600_s6, 256 }
 0x582   : > { %p1043_p11 = scmp.ne.s32.totalorder %s1550_s8, %s1042_s18  ;;  %p1047_p4 = scmp.lt.u32.totalorder %s1550_s8, %s1600_s6 }
 0x583   : > { %p1048_p10 = scmp.lt.u32.totalorder %s1046_s7, %s1042_s18  ;;  %p1050_p6 = scmp.lt.u32.totalorder %s1042_s18, %s1550_s8 }
 0x584   : > { %p1044_p12 = pnand %p1043_p11, %p1613_p13 }
 0x585   : > { %p1049_p3 = por %p1048_p10, %p1047_p4 }
 0x586   : > { %p1045_p2 = pneg %p1044_p12 }
 0x587   : > { %p1051_p7 = por %p1050_p6, %p1049_p3 }
 0x589   : > { %p1052_p5 = pnand %p1051_p7, %p1045_p2 }
 0x58b   : > { %1055 = shalt.err (!%p1052_p5)
}
 0x58c   : > { %829 = dma.vmem_to_hbm [thread:$0]  (%p1613_p13), %s1552_s29, 128, %s1550_s8, %s693_s11  }
 0x58d PF: > { %s719_s26 = sand.u32 1, %s1086_s21   ;;  %p1614_p8 = scmp.ne.s32.totalorder %s1606_s10, 0 }
 0x58e   : > { %p1615_p9 = scmp.ge.s32.totalorder %s1098_s24, 2  ;;  %s720_s16 = scalar_lea.sflag [#allocation4], %s719_s26 }
 0x590   : > { %p839_p0 = pnand %p1615_p9, %p1614_p8 }
 0x592   : > { %1081 = dma.done.wait (!%p839_p0), %s720_s16, 128  }
 0x593   : > { %1083 = vsyncadd (!%p839_p0), %s720_s16, 4294967168  ;;  %p22_p1 = scmp.ge.s32.totalorder %s1168_s27, 4   ;;  %s1616_s21 = smov %s1090_s22 }
 0x594   : > { %s1617_s22 = smov %s1094_s23  ;;  %s1618_s23 = smov %s1180_s30 }
 0x595   : > { %s1619_s24 = smov %s1168_s27  ;;  %24 = sbr.rel (!%p22_p1) target bundleno = 7 (0x7), region = 102 }
 0x59c   :  { %725 = vsyncpa [#allocation3], 1 }
 0x59d   :  { %727 = vsyncpa [#allocation3 + $0x1], 1 }
 0x59e   :  { %728 = vsyncpa [#allocation6], 1 }
 0x59f   :  { %730 = vsyncpa [#allocation6 + $0x1], 1 }
 0x5a0   :  { %731 = vsyncpa [#allocation4], 1 }
 0x5a1   :  { %733 = vsyncpa [#allocation4 + $0x1], 1 }

// kernel: tpu_custom_call.1
= control target key start
LH: loop header
LB: loop body
LE: loop exit
PB: predicated region body
PF: predicated region fallthrough
CT: control target
= control target key end

     0   :  { %11 = vsyncpa [#allocation3], 0  ;;  %s1594_s0 = inlined_call_operand.hbm [shape: f32[2,8,256], index: 0, kind: input, shape index: {}]   ;;  %s1595_s1 = inlined_call_operand.hbm [shape: f32[2,8,256], index: 1, kind: input, shape index: {}]   ;;  %s1596_s2 = inlined_call_operand.vmem [shape: bf16[8,72], index: 2, kind: input, shape index: {}]   ;;  %s1597_s3 = inlined_call_operand.vmem [shape: f32[8,1], index: 3, kind: input, shape index: {}]   ;;  %s1598_s4 = inlined_call_operand.vmem [shape: bf16[8,72], index: 4, kind: input, shape index: {}]   ;;  %s1599_s5 = inlined_call_operand.vmem [shape: f32[8,1], index: 5, kind: input, shape index: {}]   ;;  %s1600_s6 = inlined_call_operand.hbm [shape: f32[2,4,256], index: 6, kind: output, shape index: {}]  }
   0x1   :  { %13 = vsyncpa [#allocation3 + $0x1], 0 }
   0x2   :  { %14 = vsyncpa [#allocation6], 0 }
   0x3   :  { %16 = vsyncpa [#allocation6 + $0x1], 0 }
   0x4   :  { %17 = vsyncpa [#allocation4], 0 }
   0x5   :  { %19 = vsyncpa [#allocation4 + $0x1], 0  ;;  %s1143_s21 = smov 0   ;;  %s1145_s22 = smov 0  }
   0x6   :  { %s1147_s23 = smov 0   ;;  %s1149_s24 = smov 0  }
   0x7 LB: > { %s1164_s25 = sadd.s32 4294967295, %s1098_s24   ;;  %s800_s26 = sadd.s32 4294967294, %s1098_s24   ;;  %s1098_s24 = sphi %s1149_s24, %s1619_s24   ;;  %s1094_s23 = sphi %s1147_s23, %s1618_s23   ;;  %s1090_s22 = sphi %s1145_s22, %s1617_s22   ;;  %s1086_s21 = sphi %s1143_s21, %s1616_s21  }
   0x8   : > { %s1168_s27 = sadd.s32 1, %s1098_s24   ;;  %s32_s28 = sadd.s32 1, %s1094_s23 }
   0x9   : > { %s29_s29 = ssub.s32 %s1098_s24, %s1168_s27  ;;  %p39_p0 = scmp.ne.s32.totalorder %s1094_s23, %s1090_s22 }
   0xa   : > { %p30_p1 = scmp.eq.s32.totalorder %s29_s29, 0  ;;  %p40_p2 = scmp.eq.s32.totalorder %s1098_s24, 0 }
   0xb   : > { %p45_p3 = scmp.ne.s32.totalorder %s1090_s22, %s1086_s21  ;;  %p46_p4 = scmp.eq.s32.totalorder %s1164_s25, 0 }
   0xc   : > { %s1180_s30 = scalar_select %p30_p1, %s1094_s23, %s32_s28  }
   0xd   : > { %p1182_p5 = por %p40_p2, %p39_p0  ;;  %p1186_p6 = por %p46_p4, %p45_p3 }
   0xe   : > { %p179_p7 = scmp.eq.s32.totalorder %s1164_s25, 1  ;;  %p185_p8 = scmp.eq.s32.totalorder %s800_s26, 1 }
   0xf   : > { %s1604_s8 = scalar_select %p1186_p6, 1, 0 }
  0x10   : > { %p842_p10 = scmp.lt.s32.totalorder %s1098_s24, 2  ;;  %p1193_p11 = por %p179_p7, %p39_p0 }
  0x11   : > { %p1197_p12 = por %p185_p8, %p45_p3  ;;  %s1202_s11 = sand.u32 1, %s1094_s23  }
  0x12   : > { %s1605_s9 = scalar_select %p1193_p11, 1, 0 }
  0x13   : > { %s1606_s10 = scalar_select %p1197_p12, 1, 0 }
  0x14   : > { %s822_s12 = sshll.u32 %s1098_s24, 8  ;;  %s803_s13 = sshll.u32 %s1202_s11, 4 }
  0x15   : > { %s1211_s16 = scalar_lea.hbm %s1594_s0, %s822_s12  ;;  %s221_s17 = scalar_lea.vmem [#allocation2], %s803_s13 }
  0x16   : > { %s229_s18 = sshll.u32 %s221_s17, 4  ;;  %p1217_p13 = pnand %p842_p10, %p1182_p5  ;;  %s1221_s18 = int_to_ptr.vmem [resolvable:$true] %s229_s18 }
  0x17   : > { %s218_s20 = scalar_lea.sflag [#allocation3], %s1202_s11  ;;  %s968_s26 = scalar_lea.hbm %s1211_s16, 256 }
  0x18   : > { %p969_p2 = scmp.ne.s32.totalorder %s1211_s16, %s968_s26  ;;  %p970_p3 = pneg %p1217_p13 }
  0x19   : > { %s973_s7 = scalar_lea.hbm %s1594_s0, 512  ;;  %p974_p5 = scmp.lt.u32.totalorder %s1211_s16, %s1594_s0 }
  0x1a   : > { %p971_p4 = pnand %p970_p3, %p969_p2  ;;  %p975_p8 = scmp.lt.u32.totalorder %s973_s7, %s968_s26 }
  0x1b   : > { %p977_p9 = scmp.lt.u32.totalorder %s968_s26, %s1211_s16 }
  0x1c   : > { %p972_p7 = pneg %p971_p4  ;;  %p976_p10 = por %p975_p8, %p974_p5 }
  0x1e   : > { %p978_p0 = por %p977_p9, %p976_p10 }
  0x20   : > { %p979_p1 = pnand %p978_p0, %p972_p7 }
  0x22   : > { %982 = shalt.err (!%p979_p1)
}
  0x23   : > { %s983_s17 = scalar_lea.vmem %s1221_s18, 256  ;;  %s1100_s28 = smov [#allocation2]  }
  0x24   : > { %p984_p2 = scmp.ne.s32.totalorder %s1221_s18, %s983_s17  ;;  %s988_s29 = sshll.u32 %s1100_s28, 4  ;;  %s989_s29 = int_to_ptr.vmem [resolvable:$false] %s988_s29 }
  0x25   : > { %s990_s14 = scalar_lea.vmem %s989_s29, 512  ;;  %p991_p11 = scmp.lt.s32.totalorder %s1221_s18, %s989_s29 }
  0x26   : > { %p986_p4 = pnand %p984_p2, %p970_p3  ;;  %p992_p5 = scmp.lt.s32.totalorder %s990_s14, %s983_s17 }
  0x28   : > { %p987_p12 = pneg %p986_p4  ;;  %p993_p8 = por %p992_p5, %p991_p11 }
  0x2a   : > { %p994_p9 = pnand %p993_p8, %p987_p12 }
  0x2c   : > { %997 = shalt.err (!%p994_p9)
}
  0x2d   : > { %834 = dma.hbm_to_vmem [thread:$0]  (!%p1217_p13), %s1211_s16, 256, %s1221_s18, %s218_s20  }
  0x2e   : > { %p1608_p0 = scmp.lt.s32.totalorder %s1098_s24, 3  ;;  %p1609_p1 = scmp.ge.s32.totalorder %s1098_s24, 1 }
  0x2f   : > { %s1264_s17 = scalar_lea.hbm %s1595_s1, %s822_s12  ;;  %s240_s28 = scalar_lea.vmem [#allocation5], %s803_s13 }
  0x30   : > { %p1255_p7 = pnand %p1609_p1, %p1608_p0  ;;  %s248_s29 = sshll.u32 %s240_s28, 4  ;;  %s249_s29 = int_to_ptr.vmem [resolvable:$true] %s248_s29 }
  0x31   : > { %s237_s16 = scalar_lea.sflag [#allocation6], %s1202_s11  ;;  %s998_s18 = scalar_lea.hbm %s1264_s17, 256 }
  0x32   : > { %s1610_s26 = scalar_select %p1255_p7, 1, 0 }
  0x33   : > { %p999_p11 = scmp.ne.s32.totalorder %s1264_s17, %s998_s18  ;;  %s1003_s12 = scalar_lea.hbm %s1595_s1, 512 }
  0x34   : > { %p1004_p2 = scmp.lt.u32.totalorder %s1264_s17, %s1595_s1  ;;  %p1005_p4 = scmp.lt.u32.totalorder %s1003_s12, %s998_s18 }
  0x35   : > { %p1001_p12 = pnand %p999_p11, %p970_p3  ;;  %p1007_p8 = scmp.lt.u32.totalorder %s998_s18, %s1264_s17 }
  0x36   : > { %p1006_p5 = por %p1005_p4, %p1004_p2 }
  0x37   : > { %p1002_p10 = pneg %p1001_p12 }
  0x38   : > { %p1008_p9 = por %p1007_p8, %p1006_p5 }
  0x3a   : > { %p1009_p0 = pnand %p1008_p9, %p1002_p10 }
  0x3c   : > { %1012 = shalt.err (!%p1009_p0)
}
  0x3d   : > { %s1013_s11 = scalar_lea.vmem %s249_s29, 256  ;;  %s1101_s13 = smov [#allocation5]  }
  0x3e   : > { %p1014_p1 = scmp.ne.s32.totalorder %s249_s29, %s1013_s11  ;;  %s1018_s28 = sshll.u32 %s1101_s13, 4  ;;  %s1019_s28 = int_to_ptr.vmem [resolvable:$false] %s1018_s28 }
  0x3f   : > { %s1020_s20 = scalar_lea.vmem %s1019_s28, 512  ;;  %p1021_p6 = scmp.lt.s32.totalorder %s249_s29, %s1019_s28 }
  0x40   : > { %p1016_p11 = pnand %p1014_p1, %p970_p3  ;;  %p1022_p7 = scmp.lt.s32.totalorder %s1020_s20, %s1013_s11 }
  0x42   : > { %p1017_p12 = pneg %p1016_p11  ;;  %p1023_p2 = por %p1022_p7, %p1021_p6 }
  0x44   : > { %p1024_p4 = pnand %p1023_p2, %p1017_p12 }
  0x46   : > { %1027 = shalt.err (!%p1024_p4)
}
  0x47   : > { %837 = dma.hbm_to_vmem [thread:$0]  (!%p1217_p13), %s1264_s17, 256, %s249_s29, %s237_s16  }
  0x48   : > { %p1611_p10 = scmp.ne.s32.totalorder %s1610_s26, 0 }
  0x49   : > { %s1291_s18 = sand.u32 (!%p1611_p10), 1, %s1090_s22   ;;  %p1612_p3 = scmp.ne.s32.totalorder (!%p1611_p10), %s1604_s8, 0 }
  0x4a   : > { %257 = sbr.rel (%p1611_p10) target bundleno = 1421 (0x58d), region = 44  ;;  %s810_s14 = sshll.u32 (!%p1611_p10), %s1291_s18, 4 }
  0x4b   : > { %s260_s12 = scalar_lea.sflag (!%p1611_p10), [#allocation3], %s1291_s18  ;;  %s263_s7 = scalar_lea.vmem (!%p1611_p10), [#allocation2], %s810_s14 }
  0x51   : > { %1073 = dma.done.wait (%p1612_p3), %s260_s12, 256  }
  0x52   : > { %1075 = vsyncadd (%p1612_p3), %s260_s12, 4294967040  ;;  %s269_s19 = scalar_lea.sflag [#allocation6], %s1291_s18  ;;  %s1300_s17 = scalar_lea.vmem [#allocation5], %s810_s14 }
  0x53   : > { %1077 = dma.done.wait (%p1612_p3), %s269_s19, 256  }
  0x54   : > { %1079 = vsyncadd (%p1612_p3), %s269_s19, 4294967040  ;;  %v1306_v0 = vld [vmem:[%s263_s7] sm:$0xff]  ;;  %v1308_v1 = vld [vmem:[%s263_s7 + $0x8] sm:$0xff]  ;;  %s1102_s26 = smov 127   ;;  %s1103_s29 = smov 16   ;;  %v311_v3 = vlaneseq  ;;  %v1106_v34 = vmov 0  }
  0x55   : > { %v881_v2 = vpack.i.bf16 %v1308_v1, %v1306_v0  ;;  %s1104_s16 = smov 1   ;;  %s1105_s15 = smov 112   ;;  %499 = vmatprep.mubr.bf16.mxu0 %v1106_v34  ;;  %921 = vset.pattern.permute.xlu0 %v1106_v34  ;;  %v450_v35 = vld [vmem:[%s1597_s3] sm:$0xff]  ;;  %v310_v37 = vld [vmem:[%s1300_s17 + $0x8] sm:$0xff]  ;;  %vm460_vm12 = vcmask 1043456   ;;  %vm456_vm13 = vcmask 588800  }
  0x56   : > { %v1316_v4 = vand.u32 127, %v311_v3  ;;  %654 = vmatprep.mubr.bf16.mxu1 %v1106_v34  ;;  %v309_v36 = vld [vmem:[%s1300_s17] sm:$0xff]  ;;  %v338_v40 = vmul.f32 %v310_v37, %v310_v37  ;;  %s812_s19 = sshll.u32 %s1291_s18, 3  ;;  %s824_s17 = sshll.u32 %s1164_s25, 7 }
  0x57   : > { %882 = vrot.lane.b32.xlu0 %v881_v2, %s1102_s26  ;;  %897 = vrot.lane.b32.xlu1 %v881_v2, %s1103_s29  ;;  %v334_v38 = vadd.f32 %v310_v37, %v309_v36  ;;  %v337_v39 = vmul.f32 %v309_v36, %v309_v36  ;;  %s1550_s8 = scalar_lea.hbm %s1600_s6, %s824_s17  ;;  %s693_s11 = scalar_lea.sflag [#allocation4], %s1291_s18 }
  0x58   : > { %v313_v5 = vadd.s32 128, %v1316_v4  ;;  %v314_v6 = vcvt.s32.f32 %v1316_v4  ;;  %vm359_vm0 = vcmp.lt.s32.totalorder %v1316_v4, 127  ;;  %vm366_vm1 = vcmp.lt.s32.totalorder %v1316_v4, 1  ;;  %p1613_p13 = scmp.ne.s32.totalorder %s1605_s9, 0  ;;  %s1107_s13 = smov [#allocation7]  }
  0x59   : > { %v339_v41 = vadd.f32 %v338_v40, %v337_v39  ;;  %vm392_vm6 = vcmp.lt.s32.totalorder %v1316_v4, 16  ;;  %vm385_vm7 = vcmp.lt.s32.totalorder %v1316_v4, 112  ;;  %s1032_s28 = sshll.u32 %s1107_s13, 4  ;;  %s1033_s28 = int_to_ptr.vmem [resolvable:$false] %s1032_s28 }
  0x5a   : > { %v315_v7 = vcvt.s32.f32 %v313_v5  ;;  %v316_v8 = vadd.f32 0.5, %v314_v6  ;;  %s1034_s20 = scalar_lea.vmem %s1033_s28, 256 }
  0x5b   : > { %887 = vrot.lane.b32.xlu0 %v881_v2, %s1104_s16 }
  0x5c   : > { %v317_v9 = vadd.f32 0.5, %v315_v7  ;;  %v318_v10 = vmul.f32 0.0625, %v316_v8 }
  0x5e   : > { %v319_v11 = vmul.f32 0.0625, %v317_v9  ;;  %v1320_v12 = vfloor.f32 %v318_v10 }
  0x5f   : > { %892 = vrot.lane.b32.xlu0 %v881_v2, %s1105_s15 }
  0x60   : > { %v1322_v13 = vfloor.f32 %v319_v11  ;;  %v322_v14 = vmul.f32 16.0, %v1320_v12  ;;  %vm330_vm9 = vcmp.lt.f32.partialorder %v1320_v12, 0.5  ;;  %vm332_vm11 = vcmp.gt.f32.partialorder %v1320_v12, 14.5 }
  0x62   : > { %v323_v15 = vmul.f32 16.0, %v1322_v13  ;;  %v1326_v17 = vsub.f32 %v314_v6, %v322_v14  ;;  %vm331_vm8 = vcmp.lt.f32.partialorder %v1322_v13, 0.5  ;;  %vm333_vm10 = vcmp.gt.f32.partialorder %v1322_v13, 14.5  ;;  %v596_v13 = vld [vmem:[%s1598_s4] sm:$0xf] }
  0x64   : > { %v1328_v18 = vsub.f32 %v315_v7, %v323_v15  ;;  %vm328_vm2 = vcmp.gt.f32.partialorder %v1326_v17, 14.5  ;;  %vm326_vm3 = vcmp.lt.f32.partialorder %v1326_v17, 0.5 }
  0x66   : > { %vm329_vm4 = vcmp.gt.f32.partialorder %v1328_v18, 14.5  ;;  %vm327_vm5 = vcmp.lt.f32.partialorder %v1328_v18, 0.5 }
  0xc9   : > { %v883_v16 = vpop.permute.xlu0 %882  ;;  %v898_v42 = vpop.permute.xlu1 %897 }
  0xca   : > { %v885_v19 = vunpack.i.h.bf16 %v883_v16  ;;  %v884_v20 = vunpack.i.l.bf16 %v883_v16  ;;  %v900_v44 = vunpack.i.h.bf16 %v898_v42  ;;  %v899_v45 = vunpack.i.l.bf16 %v898_v42 }
  0xcc   : > { %v360_v24 = vsel %vm359_vm0, %v884_v20, %v885_v19  ;;  %v361_v25 = vsel %vm359_vm0, %v885_v19, %v884_v20  ;;  %v417_v53 = vsel %vm392_vm6, %v899_v45, %v900_v44  ;;  %v418_v54 = vsel %vm392_vm6, %v900_v44, %v899_v45 }
  0xcd   : > { %v888_v21 = vpop.permute.xlu0 %887 }
  0xce   : > { %v890_v22 = vunpack.i.h.bf16 %v888_v21  ;;  %v889_v23 = vunpack.i.l.bf16 %v888_v21 }
  0xd0   : > { %v367_v26 = vsel %vm366_vm1, %v889_v23, %v890_v22  ;;  %v368_v27 = vsel %vm366_vm1, %v890_v22, %v889_v23 }
  0xd1   : > { %v1346_v28 = vsel %vm328_vm2, %v368_v27, %v360_v24  ;;  %v1350_v29 = vsel %vm329_vm4, %v367_v26, %v361_v25  ;;  %v1354_v30 = vsel %vm326_vm3, %v360_v24, %v368_v27  ;;  %v1358_v31 = vsel %vm327_vm5, %v361_v25, %v367_v26  ;;  %v893_v43 = vpop.permute.xlu0 %892 }
  0xd2   : > { %v911_v32 = vpack.i.bf16 %v1350_v29, %v1346_v28  ;;  %v901_v33 = vpack.i.bf16 %v1358_v31, %v1354_v30  ;;  %v895_v47 = vunpack.i.h.bf16 %v893_v43  ;;  %v894_v48 = vunpack.i.l.bf16 %v893_v43 }
  0xd3   : > { %v445_v25 = vpack.c.bf16 %v1350_v29, %v1308_v1  ;;  %v444_v27 = vpack.c.bf16 %v1346_v28, %v1306_v0 }
  0xd4   : > { %912 = vrot.lane.b32.xlu0 %v911_v32, %s1105_s15  ;;  %902 = vrot.lane.b32.xlu1 %v901_v33, %s1105_s15  ;;  %v412_v57 = vsel %vm385_vm7, %v895_v47, %v894_v48  ;;  %v411_v58 = vsel %vm385_vm7, %v894_v48, %v895_v47 }
  0xd5   : > { %v420_v6 = vsel %vm331_vm8, %v412_v57, %v417_v53  ;;  %v419_v8 = vsel %vm330_vm9, %v411_v58, %v418_v54  ;;  %v421_v28 = vsel %vm332_vm11, %v418_v54, %v411_v58 }
  0xd8   : > { %907 = vrot.lane.b32.xlu1 %v901_v33, %s1103_s29  ;;  %453 = vperm.xlu0 %921, %v450_v35  }
  0xdc   : > { %917 = vrot.lane.b32.xlu1 %v911_v32, %s1103_s29  ;;  %v422_v32 = vsel %vm333_vm10, %v417_v53, %v412_v57 }
  0xf7   : > { %340 = vadd.xlane.f32.xlu0 %v339_v41 }
 0x100   : > { %335 = vadd.xlane.f32.xlu1 %v334_v38  ;;  %v439_v38 = vld [vmem:[%s1596_s2] sm:$0xf] }
 0x146   : > { %v903_v46 = vpop.permute.xlu1 %902  ;;  %v913_v49 = vpop.permute.xlu0 %912 }
 0x147   : > { %v905_v50 = vunpack.i.h.bf16 %v903_v46  ;;  %v904_v51 = vunpack.i.l.bf16 %v903_v46  ;;  %v915_v59 = vunpack.i.h.bf16 %v913_v49  ;;  %v914_v60 = vunpack.i.l.bf16 %v913_v49 }
 0x149   : > { %v387_v61 = vsel %vm385_vm7, %v905_v50, %v904_v51  ;;  %v386_v63 = vsel %vm385_vm7, %v904_v51, %v905_v50  ;;  %v427_v15 = vsel %vm385_vm7, %v914_v60, %v915_v59  ;;  %v428_v16 = vsel %vm385_vm7, %v915_v59, %v914_v60 }
 0x14a   : > { %v908_v52 = vpop.permute.xlu1 %907 }
 0x14b   : > { %v910_v55 = vunpack.i.h.bf16 %v908_v52  ;;  %v909_v56 = vunpack.i.l.bf16 %v908_v52 }
 0x14d   : > { %v393_v62 = vsel %vm392_vm6, %v909_v56, %v910_v55  ;;  %v394_v2 = vsel %vm392_vm6, %v910_v55, %v909_v56 }
 0x14e   : > { %v918_v3 = vpop.permute.xlu1 %917  ;;  %v400_v5 = vsel %vm331_vm8, %v387_v61, %v393_v62  ;;  %v399_v7 = vsel %vm330_vm9, %v386_v63, %v394_v2  ;;  %v406_v26 = vsel %vm333_vm10, %v393_v62, %v387_v61 }
 0x14f   : > { %v920_v9 = vunpack.i.h.bf16 %v918_v3  ;;  %v919_v10 = vunpack.i.l.bf16 %v918_v3  ;;  %v441_v11 = vpack.c.bf16 %v420_v6, %v400_v5  ;;  %v440_v14 = vpack.c.bf16 %v419_v8, %v399_v7 }
 0x151   : > { %v433_v19 = vsel %vm392_vm6, %v919_v10, %v920_v9  ;;  %v434_v20 = vsel %vm392_vm6, %v920_v9, %v919_v10  ;;  %467 = vmatprep.subr.bf16.mxu0 %v441_v11 }
 0x152   : > { %468 = vmatpush1.bf16.msra.mxu0 %v440_v14  ;;  %v436_v21 = vsel %vm331_vm8, %v428_v16, %v433_v19  ;;  %v435_v22 = vsel %vm330_vm9, %v427_v15, %v434_v20  ;;  %v438_v29 = vsel %vm333_vm10, %v433_v19, %v428_v16  ;;  %v437_v33 = vsel %vm332_vm11, %v434_v20, %v427_v15 }
 0x153   : > { %v443_v23 = vpack.c.bf16 %v1358_v31, %v436_v21  ;;  %v442_v24 = vpack.c.bf16 %v1354_v30, %v435_v22  ;;  %v447_v30 = vpack.c.bf16 %v422_v32, %v406_v26  ;;  %v405_v31 = vsel %vm332_vm11, %v394_v2, %v386_v63 }
 0x154   : > { %v446_v34 = vpack.c.bf16 %v421_v28, %v405_v31  ;;  %v449_v35 = vpack.c.bf16 %v438_v29, %v438_v29  ;;  %v448_v36 = vpack.c.bf16 %v437_v33, %v437_v33 }
 0x155   : > { %469 = vmatprep.subr.bf16.mxu0 %v443_v23 }
 0x156   : > { %470 = vmatpush1.bf16.msra.mxu0 %v442_v24  ;;  %v462_v37 = vsel %vm460_vm12, %v448_v36, 0 }
 0x157   : > { %471 = vmatprep.subr.bf16.mxu0 %v445_v25  ;;  %v454_v39 = vpop.permute.xlu0 %453 }
 0x15a   : > { %472 = vmatpush1.bf16.msra.mxu0 %v444_v27 }
 0x15b   : > { %473 = vmatprep.subr.bf16.mxu0 %v447_v30 }
 0x15e   : > { %474 = vmatpush1.bf16.msra.mxu0 %v446_v34 }
 0x15f   : > { %813 = vmatprep.subr.msk.bf16.mxu0 %vm460_vm12, %v449_v35 }
 0x162   : > { %476 = vmatpush1.bf16.msra.mxu0 %v462_v37 }
 0x165   : > { %814 = vmatmul.mubr.msk.bf16.vlgmr.msra.gmra.mrb[0].mxu0 %vm456_vm13, %v439_v38 }
 0x184   : > { %v341_v55 = vpop.xlane.xlu0 %340 }
 0x18d   : > { %v336_v52 = vpop.xlane.xlu1 %335 }
 0x18e   : > { %v1439_v53 = vmul.f32 0.00390625, %v336_v52 }
 0x190   : > { %v343_v54 = vmul.f32 %v1439_v53, %v336_v52 }
 0x192   : > { %v344_v56 = vsub.f32 %v341_v55, %v343_v54 }
 0x194   : > { %v345_v57 = vmax.f32 %v344_v56, 0.0 }
 0x196   : > { %v346_v58 = vmul.f32 0.003921569, %v345_v57 }
 0x198   : > { %v347_v59 = vadd.f32 1e-05, %v346_v58 }
 0x19a   : > { %962 = vrsqrt.f32 %v347_v59  ;;  %vm350_vm14 = vcmp.eq.f32.partialorder %v347_v59, inf  ;;  %v353_v9 = vand.u32 2147483648, %v347_v59  ;;  %vm352_vm15 = vcmp.eq.f32.partialorder %v347_v59, 0.0 }
 0x1a4   : > { %v963_v7 = vpop.eup %962 }
 0x1a5   : > { %v349_v8 = vmul.f32 %v963_v7, %v347_v59 }
 0x1a7   : > { %v351_v10 = vsel %vm350_vm14, %v347_v59, %v349_v8 }
 0x1a8   : > { %v1442_v14 = vsel %vm352_vm15, %v353_v9, %v351_v10 }
 0x238   : > { %v501_v40 = vpop.f32.mrb[0].mxu0 }
 0x239   : > { %v502_v41 = vadd.f32 %v501_v40, %v454_v39  ;;  %v503_v42 = vpop.f32.mrb[1].mxu0 }
 0x23a   : > { %v504_v43 = vadd.f32 %v503_v42, %v454_v39  ;;  %v505_v44 = vpop.f32.mrb[2].mxu0 }
 0x23b   : > { %v508_v45 = vmax.f32 %v502_v41, 0.0  ;;  %v506_v46 = vpop.f32.mrb[3].mxu0  ;;  %v607_v41 = vld [vmem:[%s1599_s5] sm:$0xff] }
 0x23c   : > { %v509_v47 = vmax.f32 %v504_v43, 0.0 }
 0x23d   : > { %v513_v48 = vmul.f32 %v508_v45, %v508_v45 }
 0x23e   : > { %v510_v49 = vadd.f32 %v509_v47, %v508_v45  ;;  %v514_v50 = vmul.f32 %v509_v47, %v509_v47 }
 0x240   : > { %511 = vadd.xlane.f32.xlu1 %v510_v49  ;;  %v515_v51 = vadd.f32 %v514_v50, %v513_v48 }
 0x242   : > { %516 = vadd.xlane.f32.xlu0 %v515_v51 }
 0x2cd   : > { %v512_v60 = vpop.xlane.xlu1 %511 }
 0x2ce   : > { %v518_v61 = vmul.f32 0.00390625, %v512_v60 }
 0x2cf   : > { %v517_v63 = vpop.xlane.xlu0 %516 }
 0x2d0   : > { %v519_v62 = vmul.f32 %v518_v61, %v512_v60  ;;  %v525_v15 = vsub.f32 %v508_v45, %v518_v61  ;;  %v526_v16 = vsub.f32 %v509_v47, %v518_v61 }
 0x2d2   : > { %v520_v2 = vsub.f32 %v517_v63, %v519_v62 }
 0x2d4   : > { %v521_v3 = vmax.f32 %v520_v2, 0.0 }
 0x2d6   : > { %v522_v5 = vmul.f32 0.003921569, %v521_v3 }
 0x2d8   : > { %v523_v6 = vadd.f32 1e-05, %v522_v5 }
 0x2da   : > { %964 = vrsqrt.f32 %v523_v6 }
 0x2e4   : > { %v965_v11 = vpop.eup %964 }
 0x2e5   : > { %v527_v19 = vmul.f32 %v965_v11, %v1442_v14 }
 0x2e7   : > { %v528_v20 = vmul.f32 %v527_v19, %v525_v15  ;;  %v529_v21 = vmul.f32 %v527_v19, %v526_v16 }
 0x2e9   : > { %v1446_v22 = vadd.f32 %v528_v20, %v1439_v53  ;;  %v1449_v23 = vadd.f32 %v529_v21, %v1439_v53 }
 0x2eb   : > { %v927_v24 = vpack.i.bf16 %v1449_v23, %v1446_v22 }
 0x2ed   : > { %928 = vrot.lane.b32.xlu0 %v927_v24, %s1104_s16  ;;  %923 = vrot.lane.b32.xlu1 %v927_v24, %s1102_s26  ;;  %s305_s26 = scalar_lea.vmem [#allocation7], %s812_s19 }
 0x2f1   : > { %933 = vrot.lane.b32.xlu0 %v927_v24, %s1105_s15  ;;  %938 = vrot.lane.b32.xlu1 %v927_v24, %s1103_s29 }
 0x35f   : > { %v929_v25 = vpop.permute.xlu0 %928  ;;  %v924_v26 = vpop.permute.xlu1 %923 }
 0x360   : > { %v931_v27 = vunpack.i.h.bf16 %v929_v25  ;;  %v930_v32 = vunpack.i.l.bf16 %v929_v25  ;;  %v926_v30 = vunpack.i.h.bf16 %v924_v26  ;;  %v925_v31 = vunpack.i.l.bf16 %v924_v26 }
 0x362   : > { %v542_v29 = vsel %vm366_vm1, %v930_v32, %v931_v27  ;;  %v543_v33 = vsel %vm366_vm1, %v931_v27, %v930_v32  ;;  %v536_v28 = vsel %vm359_vm0, %v925_v31, %v926_v30  ;;  %v537_v34 = vsel %vm359_vm0, %v926_v30, %v925_v31 }
 0x363   : > { %v1467_v35 = vsel %vm328_vm2, %v543_v33, %v536_v28  ;;  %v547_v36 = vsel %vm329_vm4, %v542_v29, %v537_v34  ;;  %v544_v37 = vsel %vm326_vm3, %v536_v28, %v543_v33  ;;  %v545_v38 = vsel %vm327_vm5, %v537_v34, %v542_v29  ;;  %v939_v17 = vpop.permute.xlu1 %938  ;;  %v934_v42 = vpop.permute.xlu0 %933 }
 0x364   : > { %v952_v39 = vpack.i.bf16 %v547_v36, %v1467_v35  ;;  %v942_v40 = vpack.i.bf16 %v545_v38, %v544_v37  ;;  %v936_v18 = vunpack.i.h.bf16 %v934_v42  ;;  %v935_v43 = vunpack.i.l.bf16 %v934_v42 }
 0x365   : > { %v941_v44 = vunpack.i.h.bf16 %v939_v17  ;;  %v940_v45 = vunpack.i.l.bf16 %v939_v17  ;;  %v602_v27 = vpack.c.bf16 %v547_v36, %v1449_v23  ;;  %v601_v4 = vpack.c.bf16 %v1467_v35, %v1446_v22 }
 0x366   : > { %953 = vrot.lane.b32.xlu0 %v952_v39, %s1105_s15  ;;  %943 = vrot.lane.b32.xlu1 %v942_v40, %s1105_s15  ;;  %v569_v51 = vsel %vm385_vm7, %v936_v18, %v935_v43  ;;  %v568_v56 = vsel %vm385_vm7, %v935_v43, %v936_v18 }
 0x367   : > { %v574_v52 = vsel %vm392_vm6, %v940_v45, %v941_v44  ;;  %v575_v57 = vsel %vm392_vm6, %v941_v44, %v940_v45 }
 0x368   : > { %v577_v5 = vsel %vm331_vm8, %v569_v51, %v574_v52  ;;  %v576_v7 = vsel %vm330_vm9, %v568_v56, %v575_v57  ;;  %v579_v30 = vsel %vm333_vm10, %v574_v52, %v569_v51  ;;  %v578_v28 = vsel %vm332_vm11, %v575_v57, %v568_v56 }
 0x36a   : > { %610 = vperm.xlu0 %921, %v607_v41   ;;  %948 = vrot.lane.b32.xlu1 %v942_v40, %s1103_s29 }
 0x36e   : > { %958 = vrot.lane.b32.xlu1 %v952_v39, %s1103_s29  ;;  %s707_s29 = sshll.u32 %s305_s26, 4  ;;  %s1552_s29 = int_to_ptr.vmem [resolvable:$true] %s707_s29 }
 0x36f   : > { %s1028_s25 = scalar_lea.vmem %s1552_s29, 128  ;;  %p1035_p8 = scmp.lt.s32.totalorder %s1552_s29, %s1033_s28 }
 0x370   : > { %p1029_p6 = scmp.ne.s32.totalorder %s1552_s29, %s1028_s25  ;;  %p1036_p9 = scmp.lt.s32.totalorder %s1034_s20, %s1028_s25 }
 0x372   : > { %p1030_p7 = pnand %p1029_p6, %p1613_p13  ;;  %p1037_p0 = por %p1036_p9, %p1035_p8 }
 0x374   : > { %p1031_p5 = pneg %p1030_p7 }
 0x376   : > { %p1038_p1 = pnand %p1037_p0, %p1031_p5 }
 0x3d8   : > { %v944_v46 = vpop.permute.xlu1 %943  ;;  %v954_v47 = vpop.permute.xlu0 %953 }
 0x3d9   : > { %v946_v48 = vunpack.i.h.bf16 %v944_v46  ;;  %v945_v49 = vunpack.i.l.bf16 %v944_v46  ;;  %v956_v58 = vunpack.i.h.bf16 %v954_v47  ;;  %v955_v59 = vunpack.i.l.bf16 %v954_v47 }
 0x3db   : > { %v553_v60 = vsel %vm385_vm7, %v946_v48, %v945_v49  ;;  %v552_v62 = vsel %vm385_vm7, %v945_v49, %v946_v48  ;;  %v584_v15 = vsel %vm385_vm7, %v955_v59, %v956_v58  ;;  %v585_v16 = vsel %vm385_vm7, %v956_v58, %v955_v59 }
 0x3dc   : > { %v949_v50 = vpop.permute.xlu1 %948 }
 0x3dd   : > { %v951_v54 = vunpack.i.h.bf16 %v949_v50  ;;  %v950_v55 = vunpack.i.l.bf16 %v949_v50 }
 0x3df   : > { %v558_v61 = vsel %vm392_vm6, %v950_v55, %v951_v54  ;;  %v559_v63 = vsel %vm392_vm6, %v951_v54, %v950_v55 }
 0x3e0   : > { %v959_v2 = vpop.permute.xlu1 %958  ;;  %v561_v3 = vsel %vm331_vm8, %v553_v60, %v558_v61  ;;  %v560_v6 = vsel %vm330_vm9, %v552_v62, %v559_v63  ;;  %v563_v32 = vsel %vm333_vm10, %v558_v61, %v553_v60  ;;  %v562_v29 = vsel %vm332_vm11, %v559_v63, %v552_v62 }
 0x3e1   : > { %v961_v8 = vunpack.i.h.bf16 %v959_v2  ;;  %v960_v9 = vunpack.i.l.bf16 %v959_v2  ;;  %v598_v10 = vpack.c.bf16 %v577_v5, %v561_v3  ;;  %v597_v11 = vpack.c.bf16 %v576_v7, %v560_v6 }
 0x3e2   : > { %v604_v31 = vpack.c.bf16 %v579_v30, %v563_v32  ;;  %v603_v34 = vpack.c.bf16 %v578_v28, %v562_v29 }
 0x3e3   : > { %v590_v19 = vsel %vm392_vm6, %v960_v9, %v961_v8  ;;  %v591_v20 = vsel %vm392_vm6, %v961_v8, %v960_v9  ;;  %622 = vmatprep.subr.bf16.mxu1 %v598_v10 }
 0x3e4   : > { %623 = vmatpush1.bf16.msra.mxu1 %v597_v11  ;;  %v593_v21 = vsel %vm331_vm8, %v585_v16, %v590_v19  ;;  %v592_v24 = vsel %vm330_vm9, %v584_v15, %v591_v20  ;;  %v595_v33 = vsel %vm333_vm10, %v590_v19, %v585_v16  ;;  %v594_v23 = vsel %vm332_vm11, %v591_v20, %v584_v15 }
 0x3e5   : > { %v600_v25 = vpack.c.bf16 %v545_v38, %v593_v21  ;;  %v599_v26 = vpack.c.bf16 %v544_v37, %v592_v24  ;;  %v606_v22 = vpack.c.bf16 %v595_v33, %v595_v33  ;;  %v605_v35 = vpack.c.bf16 %v594_v23, %v594_v23 }
 0x3e7   : > { %624 = vmatprep.subr.bf16.mxu1 %v600_v25  ;;  %v617_v36 = vsel %vm460_vm12, %v605_v35, 0 }
 0x3e8   : > { %625 = vmatpush1.bf16.msra.mxu1 %v599_v26 }
 0x3e9   : > { %626 = vmatprep.subr.bf16.mxu1 %v602_v27  ;;  %v611_v37 = vpop.permute.xlu0 %610 }
 0x3ec   : > { %627 = vmatpush1.bf16.msra.mxu1 %v601_v4 }
 0x3ed   : > { %628 = vmatprep.subr.bf16.mxu1 %v604_v31 }
 0x3f0   : > { %629 = vmatpush1.bf16.msra.mxu1 %v603_v34 }
 0x3f1   : > { %815 = vmatprep.subr.msk.bf16.mxu1 %vm460_vm12, %v606_v22 }
 0x3f4   : > { %631 = vmatpush1.bf16.msra.mxu1 %v617_v36 }
 0x3f7   : > { %816 = vmatmul.mubr.msk.bf16.vlgmr.msra.gmra.mrb[0].mxu1 %vm456_vm13, %v596_v13 }
 0x4ca   : > { %v656_v38 = vpop.f32.mrb[0].mxu1 }
 0x4cb   : > { %v657_v39 = vadd.f32 %v656_v38, %v611_v37  ;;  %v658_v12 = vpop.f32.mrb[1].mxu1 }
 0x4cc   : > { %v659_v40 = vadd.f32 %v658_v12, %v611_v37  ;;  %v660_v41 = vpop.f32.mrb[2].mxu1 }
 0x4cd   : > { %v661_v17 = vpop.f32.mrb[3].mxu1  ;;  %v666_v42 = vmul.f32 %v657_v39, %v657_v39 }
 0x4ce   : > { %v663_v18 = vadd.f32 %v659_v40, %v657_v39  ;;  %v667_v43 = vmul.f32 %v659_v40, %v659_v40 }
 0x4d0   : > { %664 = vadd.xlane.f32.xlu1 %v663_v18  ;;  %v668_v44 = vadd.f32 %v667_v43, %v666_v42 }
 0x4d2   : > { %669 = vadd.xlane.f32.xlu0 %v668_v44 }
 0x55d   : > { %v665_v45 = vpop.xlane.xlu1 %664 }
 0x55e   : > { %v671_v46 = vmul.f32 0.00390625, %v665_v45 }
 0x55f   : > { %v670_v48 = vpop.xlane.xlu0 %669 }
 0x560   : > { %v672_v47 = vmul.f32 %v671_v46, %v665_v45  ;;  %v678_v55 = vsub.f32 %v657_v39, %v671_v46  ;;  %v679_v56 = vsub.f32 %v659_v40, %v671_v46 }
 0x562   : > { %v673_v49 = vsub.f32 %v670_v48, %v672_v47 }
 0x564   : > { %v674_v50 = vmax.f32 %v673_v49, 0.0 }
 0x566   : > { %v675_v51 = vmul.f32 0.003921569, %v674_v50 }
 0x568   : > { %v676_v52 = vadd.f32 1e-05, %v675_v51 }
 0x56a   : > { %966 = vrsqrt.f32 %v676_v52 }
 0x574   : > { %v967_v54 = vpop.eup %966 }
 0x575   : > { %v680_v57 = vmul.f32 %v967_v54, %v1442_v14 }
 0x577   : > { %v681_v58 = vmul.f32 %v680_v57, %v678_v55  ;;  %v682_v59 = vmul.f32 %v680_v57, %v679_v56 }
 0x579   : > { %v683_v60 = vadd.f32 %v681_v58, %v1439_v53  ;;  %v684_v61 = vadd.f32 %v682_v59, %v1439_v53 }
 0x57b   : > { %v685_v62 = vadd.f32 %v683_v60, %v1306_v0  ;;  %v686_v63 = vadd.f32 %v684_v61, %v1308_v1 }
 0x57d   : > { %v689_v2 = vcombine.low %v685_v62, %v686_v63 }
 0x57f   : > { %691 = vst [vmem:[%s305_s26] sm:$0xff] %v689_v2 }
 0x580   : > { %1041 = shalt.err (!%p1038_p1)
}
 0x581   : > { %s1042_s18 = scalar_lea.hbm %s1550_s8, 128  ;;  %s1046_s7 = scalar_lea.hbm %s1600_s6, 256 }
 0x582   : > { %p1043_p11 = scmp.ne.s32.totalorder %s1550_s8, %s1042_s18  ;;  %p1047_p4 = scmp.lt.u32.totalorder %s1550_s8, %s1600_s6 }
 0x583   : > { %p1048_p10 = scmp.lt.u32.totalorder %s1046_s7, %s1042_s18  ;;  %p1050_p6 = scmp.lt.u32.totalorder %s1042_s18, %s1550_s8 }
 0x584   : > { %p1044_p12 = pnand %p1043_p11, %p1613_p13 }
 0x585   : > { %p1049_p3 = por %p1048_p10, %p1047_p4 }
 0x586   : > { %p1045_p2 = pneg %p1044_p12 }
 0x587   : > { %p1051_p7 = por %p1050_p6, %p1049_p3 }
 0x589   : > { %p1052_p5 = pnand %p1051_p7, %p1045_p2 }
 0x58b   : > { %1055 = shalt.err (!%p1052_p5)
}
 0x58c   : > { %829 = dma.vmem_to_hbm [thread:$0]  (%p1613_p13), %s1552_s29, 128, %s1550_s8, %s693_s11  }
 0x58d PF: > { %s719_s26 = sand.u32 1, %s1086_s21   ;;  %p1614_p8 = scmp.ne.s32.totalorder %s1606_s10, 0 }
 0x58e   : > { %p1615_p9 = scmp.ge.s32.totalorder %s1098_s24, 2  ;;  %s720_s16 = scalar_lea.sflag [#allocation4], %s719_s26 }
 0x590   : > { %p839_p0 = pnand %p1615_p9, %p1614_p8 }
 0x592   : > { %1081 = dma.done.wait (!%p839_p0), %s720_s16, 128  }
 0x593   : > { %1083 = vsyncadd (!%p839_p0), %s720_s16, 4294967168  ;;  %p22_p1 = scmp.ge.s32.totalorder %s1168_s27, 4   ;;  %s1616_s21 = smov %s1090_s22 }
 0x594   : > { %s1617_s22 = smov %s1094_s23  ;;  %s1618_s23 = smov %s1180_s30 }
 0x595   : > { %s1619_s24 = smov %s1168_s27  ;;  %24 = sbr.rel (!%p22_p1) target bundleno = 7 (0x7), region = 102 }
 0x59c   :  { %725 = vsyncpa [#allocation3], 1 }
 0x59d   :  { %727 = vsyncpa [#allocation3 + $0x1], 1 }
 0x59e   :  { %728 = vsyncpa [#allocation6], 1 }
 0x59f   :  { %730 = vsyncpa [#allocation6 + $0x1], 1 }
 0x5a0   :  { %731 = vsyncpa [#allocation4], 1 }
 0x5a1   :  { %733 = vsyncpa [#allocation4 + $0x1], 1 }

</bundles_post_ra>
